<compile_context>
chip_gen: v7x
topology: tpu7x:2x2x1
jax: 0.10.0
libtpu: 0.0.40
codegen_flags: <defaults>
</compile_context>

<pallas_src>
import functools
import math

import jax
import jax.numpy as jnp
from jax.experimental import pallas as pl
from jax.experimental.pallas import tpu as pltpu

# ---------------- small synthetic BERT config ----------------
VOCAB = 64
TYPE_VOCAB = 2
MAX_POS = 16
HIDDEN = 32
N_HEADS = 4
HEAD_DIM = HIDDEN // N_HEADS
N_LAYERS = 2
INTERMEDIATE = 64
LN_EPS = 1e-12

BATCH = 2
SEQ = 8


# ---------------- in-kernel helpers ----------------
def _layernorm(x, g, b, eps=LN_EPS):
    mu = jnp.mean(x, axis=-1, keepdims=True)
    xc = x - mu
    var = jnp.mean(xc * xc, axis=-1, keepdims=True)
    return xc * jax.lax.rsqrt(var + eps) * g + b


def _gelu_tanh(x):
    # TODO(synk): HF BERT default is exact (erf) GELU; tanh approximation is used
    # so the transcendental lowers cleanly on the EUP.
    return 0.5 * x * (1.0 + jnp.tanh(0.7978845608028654 * (x + 0.044715 * x * x * x)))


def _mm(a, b):
    # bf16 MXU operands, f32 accumulation; epilogues stay f32.
    return jnp.dot(a.astype(jnp.bfloat16), b.astype(jnp.bfloat16),
                   preferred_element_type=jnp.float32)


# ---------------- fused encoder kernel (one grid step per layer) ----------------
def _encoder_kernel(emb_ref, mask_ref, eg_ref, eb_ref,
                    wqkv_ref, bqkv_ref, wo_ref, bo_ref, g1_ref, b1_ref,
                    wi_ref, bi_ref, wo2_ref, bo2_ref, g2_ref, b2_ref,
                    out_ref, x_scr, ctx_scr, *, batch, seq):
    layer = pl.program_id(0)

    # Embedding LayerNorm (no residual) only on the first grid step; the result
    # stays resident in VMEM scratch for the whole encoder.
    @pl.when(layer == 0)
    def _():
        x_scr[...] = _layernorm(emb_ref[...], eg_ref[...], eb_ref[...])

    x = x_scr[...]                                          # [B*S, H] f32 (VMEM-resident)

    # ---- fused Q/K/V projection (attention scale pre-folded into Q weights) ----
    qkv = _mm(x, wqkv_ref[0]) + bqkv_ref[0]                 # [B*S, 3H]
    qkv = qkv.reshape(batch, seq, 3 * HIDDEN)               # leading-dim split only

    # ---- additive attention bias built in-kernel from the [B, S] mask ----
    bias = ((1.0 - mask_ref[...]) * -1e9)[:, None, :]       # [B, 1, S]

    # ---- multi-head attention: heads unrolled, batch via batched einsum ----
    for h in range(N_HEADS):
        qh = qkv[:, :, h * HEAD_DIM:(h + 1) * HEAD_DIM]
        kh = qkv[:, :, HIDDEN + h * HEAD_DIM:HIDDEN + (h + 1) * HEAD_DIM]
        vh = qkv[:, :, 2 * HIDDEN + h * HEAD_DIM:2 * HIDDEN + (h + 1) * HEAD_DIM]

        s = jnp.einsum('bqd,bkd->bqk',
                       qh.astype(jnp.bfloat16), kh.astype(jnp.bfloat16),
                       preferred_element_type=jnp.float32)   # [B, S, S]
        s = s + bias
        m = jnp.max(s, axis=-1, keepdims=True)
        p = jnp.exp(s - m)
        p = p * pl.reciprocal(jnp.sum(p, axis=-1, keepdims=True), approx=True)
        ch = jnp.einsum('bqk,bkd->bqd',
                        p.astype(jnp.bfloat16), vh.astype(jnp.bfloat16),
                        preferred_element_type=jnp.float32)  # [B, S, dh]
        ctx_scr[:, h * HEAD_DIM:(h + 1) * HEAD_DIM] = ch.reshape(batch * seq, HEAD_DIM)

    # ---- attention output projection + residual + LN ----
    attn_out = _mm(ctx_scr[...], wo_ref[0]) + bo_ref[0]
    x1 = _layernorm(attn_out + x, g1_ref[0], b1_ref[0])

    # ---- FFN (GELU) + residual + LN ----
    hmid = _gelu_tanh(_mm(x1, wi_ref[0]) + bi_ref[0])
    ffn = _mm(hmid, wo2_ref[0]) + bo2_ref[0]
    x2 = _layernorm(ffn + x1, g2_ref[0], b2_ref[0])

    x_scr[...] = x2

    @pl.when(layer == pl.num_programs(0) - 1)
    def _():
        out_ref[...] = x2


# ---------------- BERT tower (one of bertQ / bertD) ----------------
@jax.jit
def bert_encode(params, input_ids, attention_mask):
    B, S = input_ids.shape

    # Embedding gathers are plain-JAX glue. token_type_ids default to zeros
    # (matches the HF BertModel default when none are passed).
    emb = (params["word_emb"][input_ids]
           + params["pos_emb"][jnp.arange(S)][None, :, :]
           + params["type_emb"][0][None, None, :]).reshape(B * S, HIDDEN)

    stk = params["stacked"]
    kernel = functools.partial(_encoder_kernel, batch=B, seq=S)

    hidden = pl.pallas_call(
        kernel,
        out_shape=jax.ShapeDtypeStruct((B * S, HIDDEN), jnp.float32),
        grid=(N_LAYERS,),
        in_specs=[
            pl.BlockSpec((B * S, HIDDEN), lambda l: (0, 0)),              # emb
            pl.BlockSpec((B, S), lambda l: (0, 0)),                       # attention mask
            pl.BlockSpec((1, HIDDEN), lambda l: (0, 0)),                  # emb LN gamma
            pl.BlockSpec((1, HIDDEN), lambda l: (0, 0)),                  # emb LN beta
            pl.BlockSpec((1, HIDDEN, 3 * HIDDEN), lambda l: (l, 0, 0)),   # wqkv
            pl.BlockSpec((1, 1, 3 * HIDDEN), lambda l: (l, 0, 0)),        # bqkv
            pl.BlockSpec((1, HIDDEN, HIDDEN), lambda l: (l, 0, 0)),       # wo
            pl.BlockSpec((1, 1, HIDDEN), lambda l: (l, 0, 0)),            # bo
            pl.BlockSpec((1, 1, HIDDEN), lambda l: (l, 0, 0)),            # ln1 gamma
            pl.BlockSpec((1, 1, HIDDEN), lambda l: (l, 0, 0)),            # ln1 beta
            pl.BlockSpec((1, HIDDEN, INTERMEDIATE), lambda l: (l, 0, 0)), # wi
            pl.BlockSpec((1, 1, INTERMEDIATE), lambda l: (l, 0, 0)),      # bi
            pl.BlockSpec((1, INTERMEDIATE, HIDDEN), lambda l: (l, 0, 0)), # wo2
            pl.BlockSpec((1, 1, HIDDEN), lambda l: (l, 0, 0)),            # bo2
            pl.BlockSpec((1, 1, HIDDEN), lambda l: (l, 0, 0)),            # ln2 gamma
            pl.BlockSpec((1, 1, HIDDEN), lambda l: (l, 0, 0)),            # ln2 beta
        ],
        out_specs=pl.BlockSpec((B * S, HIDDEN), lambda l: (0, 0)),
        scratch_shapes=[
            pltpu.VMEM((B * S, HIDDEN), jnp.float32),   # resident activations
            pltpu.VMEM((B * S, HIDDEN), jnp.float32),   # per-layer attention context
        ],
        compiler_params=pltpu.CompilerParams(
            dimension_semantics=("arbitrary",)),        # layer axis is sequential
    )(emb, attention_mask.astype(jnp.float32),
      params["emb_ln_g"], params["emb_ln_b"],
      stk["wqkv"], stk["bqkv"], stk["wo"], stk["bo"], stk["ln1g"], stk["ln1b"],
      stk["wi"], stk["bi"], stk["wo2"], stk["bo2"], stk["ln2g"], stk["ln2b"])

    return hidden.reshape(B, S, HIDDEN)


def bert_dot_dual_forward(params_q, params_d, input_ids, attention_mask, is_query):
    """BertDot_Dual.forward: run bertQ if is_query else bertD, return CLS ([:, 0])."""
    params = params_q if is_query else params_d
    hidden = bert_encode(params, input_ids, attention_mask)
    return hidden[:, 0]  # "first": [B, HIDDEN]


# ---------------- deterministic parameter init (std=0.02, like _init_weights) ----------------
def init_tower(key):
    keys = jax.random.split(key, 3 + N_LAYERS)

    def normal(k, shape):
        return 0.02 * jax.random.normal(k, shape, dtype=jnp.float32)

    scale = 1.0 / math.sqrt(HEAD_DIM)

    wqkv, bqkv, wo, bo, ln1g, ln1b = [], [], [], [], [], []
    wi, bi, wo2, bo2, ln2g, ln2b = [], [], [], [], [], []
    for l in range(N_LAYERS):
        lk = jax.random.split(keys[3 + l], 6)
        wq = normal(lk[0], (HIDDEN, HIDDEN))
        wk = normal(lk[1], (HIDDEN, HIDDEN))
        wv = normal(lk[2], (HIDDEN, HIDDEN))
        # Fuse Q/K/V into one projection; fold 1/sqrt(head_dim) into the Q block
        # (the Q bias is zero, so it needs no scaling).
        wqkv.append(jnp.concatenate([wq * scale, wk, wv], axis=1))
        bqkv.append(jnp.zeros((1, 3 * HIDDEN), jnp.float32))
        wo.append(normal(lk[3], (HIDDEN, HIDDEN)))
        bo.append(jnp.zeros((1, HIDDEN), jnp.float32))
        ln1g.append(jnp.ones((1, HIDDEN), jnp.float32))
        ln1b.append(jnp.zeros((1, HIDDEN), jnp.float32))
        wi.append(normal(lk[4], (HIDDEN, INTERMEDIATE)))
        bi.append(jnp.zeros((1, INTERMEDIATE), jnp.float32))
        wo2.append(normal(lk[5], (INTERMEDIATE, HIDDEN)))
        bo2.append(jnp.zeros((1, HIDDEN), jnp.float32))
        ln2g.append(jnp.ones((1, HIDDEN), jnp.float32))
        ln2b.append(jnp.zeros((1, HIDDEN), jnp.float32))

    return {
        "word_emb": normal(keys[0], (VOCAB, HIDDEN)),
        "pos_emb": normal(keys[1], (MAX_POS, HIDDEN)),
        "type_emb": normal(keys[2], (TYPE_VOCAB, HIDDEN)),
        "emb_ln_g": jnp.ones((1, HIDDEN), jnp.float32),
        "emb_ln_b": jnp.zeros((1, HIDDEN), jnp.float32),
        "stacked": {
            "wqkv": jnp.stack(wqkv), "bqkv": jnp.stack(bqkv),
            "wo": jnp.stack(wo), "bo": jnp.stack(bo),
            "ln1g": jnp.stack(ln1g), "ln1b": jnp.stack(ln1b),
            "wi": jnp.stack(wi), "bi": jnp.stack(bi),
            "wo2": jnp.stack(wo2), "bo2": jnp.stack(bo2),
            "ln2g": jnp.stack(ln2g), "ln2b": jnp.stack(ln2b),
        },
    }


if __name__ == "__main__":
    key = jax.random.PRNGKey(0)
    kq, kd, kids = jax.random.split(key, 3)

    params_q = init_tower(kq)   # bertQ
    params_d = init_tower(kd)   # bertD

    input_ids = jax.random.randint(kids, (BATCH, SEQ), 0, VOCAB, dtype=jnp.int32)
    attention_mask = jnp.array(
        [[1, 1, 1, 1, 1, 1, 1, 1],
         [1, 1, 1, 1, 1, 0, 0, 0]], dtype=jnp.float32)

    query_emb = bert_dot_dual_forward(params_q, params_d, input_ids, attention_mask,
                                      is_query=True)
    body_emb = bert_dot_dual_forward(params_q, params_d, input_ids, attention_mask,
                                     is_query=False)

    jax.block_until_ready(query_emb)
    jax.block_until_ready(body_emb)

    assert query_emb.shape == (BATCH, HIDDEN)
    assert body_emb.shape == (BATCH, HIDDEN)
    assert bool(jnp.all(jnp.isfinite(query_emb))) and bool(jnp.all(jnp.isfinite(body_emb)))

    print("KERNEL_OK")
</pallas_src>

<mosaic_0001>
module attributes {stable_mosaic.version = 11 : i64} {
  func.func @_encoder_kernel(%arg0: i32, %arg1: memref<16x32xf32, #tpu.memory_space<vmem>>, %arg2: memref<2x8xf32, #tpu.memory_space<vmem>>, %arg3: memref<1x32xf32, #tpu.memory_space<vmem>>, %arg4: memref<1x32xf32, #tpu.memory_space<vmem>>, %arg5: memref<1x32x96xf32, #tpu.memory_space<vmem>>, %arg6: memref<1x1x96xf32, #tpu.memory_space<vmem>>, %arg7: memref<1x32x32xf32, #tpu.memory_space<vmem>>, %arg8: memref<1x1x32xf32, #tpu.memory_space<vmem>>, %arg9: memref<1x1x32xf32, #tpu.memory_space<vmem>>, %arg10: memref<1x1x32xf32, #tpu.memory_space<vmem>>, %arg11: memref<1x32x64xf32, #tpu.memory_space<vmem>>, %arg12: memref<1x1x64xf32, #tpu.memory_space<vmem>>, %arg13: memref<1x64x32xf32, #tpu.memory_space<vmem>>, %arg14: memref<1x1x32xf32, #tpu.memory_space<vmem>>, %arg15: memref<1x1x32xf32, #tpu.memory_space<vmem>>, %arg16: memref<1x1x32xf32, #tpu.memory_space<vmem>>, %arg17: memref<16x32xf32, #tpu.memory_space<vmem>>, %arg18: memref<16x32xf32, #tpu.memory_space<vmem>>, %arg19: memref<16x32xf32, #tpu.memory_space<vmem>>) attributes {dimension_semantics = [#tpu.dimension_semantics<arbitrary>], iteration_bounds = array<i64: 2>, scalar_prefetch = 0 : i64, scratch_operands = 2 : i64, tpu.core_type = #tpu.core_type<tc>, window_params = [{pipeline_mode = #tpu.pipeline_mode<synchronous>, transform_indices = @transform_0, window_bounds = array<i64: 16, 32>}, {pipeline_mode = #tpu.pipeline_mode<synchronous>, transform_indices = @transform_1, window_bounds = array<i64: 2, 8>}, {pipeline_mode = #tpu.pipeline_mode<synchronous>, transform_indices = @transform_2, window_bounds = array<i64: 1, 32>}, {pipeline_mode = #tpu.pipeline_mode<synchronous>, transform_indices = @transform_3, window_bounds = array<i64: 1, 32>}, {transform_indices = @transform_4, window_bounds = array<i64: 1, 32, 96>}, {transform_indices = @transform_5, window_bounds = array<i64: 1, 1, 96>}, {transform_indices = @transform_6, window_bounds = array<i64: 1, 32, 32>}, {transform_indices = @transform_7, window_bounds = array<i64: 1, 1, 32>}, {transform_indices = @transform_8, window_bounds = array<i64: 1, 1, 32>}, {transform_indices = @transform_9, window_bounds = array<i64: 1, 1, 32>}, {transform_indices = @transform_10, window_bounds = array<i64: 1, 32, 64>}, {transform_indices = @transform_11, window_bounds = array<i64: 1, 1, 64>}, {transform_indices = @transform_12, window_bounds = array<i64: 1, 64, 32>}, {transform_indices = @transform_13, window_bounds = array<i64: 1, 1, 32>}, {transform_indices = @transform_14, window_bounds = array<i64: 1, 1, 32>}, {transform_indices = @transform_15, window_bounds = array<i64: 1, 1, 32>}, {pipeline_mode = #tpu.pipeline_mode<synchronous>, transform_indices = @transform_16, window_bounds = array<i64: 16, 32>}]} {
    %c0_i32 = arith.constant 0 : i32
    %0 = arith.cmpi eq, %arg0, %c0_i32 : i32
    %1 = arith.extui %0 : i1 to i32
    %c0_i32_0 = arith.constant 0 : i32
    %2 = arith.cmpi ne, %1, %c0_i32_0 : i32
    scf.if %2 {
      %c0_85 = arith.constant 0 : index
      %c0_86 = arith.constant 0 : index
      %207 = vector.load %arg1[%c0_85, %c0_86] : memref<16x32xf32, #tpu.memory_space<vmem>>, vector<16x32xf32>
      %c0_87 = arith.constant 0 : index
      %c0_88 = arith.constant 0 : index
      %208 = vector.load %arg3[%c0_87, %c0_88] : memref<1x32xf32, #tpu.memory_space<vmem>>, vector<1x32xf32>
      %c0_89 = arith.constant 0 : index
      %c0_90 = arith.constant 0 : index
      %209 = vector.load %arg4[%c0_89, %c0_90] : memref<1x32xf32, #tpu.memory_space<vmem>>, vector<1x32xf32>
      %cst_91 = arith.constant dense<0.000000e+00> : vector<16xf32>
      %210 = vector.multi_reduction <add>, %207, %cst_91 [1] : vector<16x32xf32> to vector<16xf32>
      %211 = vector.shape_cast %210 : vector<16xf32> to vector<16x1xf32>
      %cst_92 = arith.constant 3.200000e+01 : f32
      %212 = vector.broadcast %cst_92 : f32 to vector<16x1xf32>
      %213 = arith.divf %211, %212 : vector<16x1xf32>
      %214 = vector.broadcast %213 : vector<16x1xf32> to vector<16x32xf32>
      %215 = arith.subf %207, %214 : vector<16x32xf32>
      %216 = arith.mulf %215, %215 : vector<16x32xf32>
      %cst_93 = arith.constant dense<0.000000e+00> : vector<16xf32>
      %217 = vector.multi_reduction <add>, %216, %cst_93 [1] : vector<16x32xf32> to vector<16xf32>
      %218 = vector.shape_cast %217 : vector<16xf32> to vector<16x1xf32>
      %cst_94 = arith.constant 3.200000e+01 : f32
      %219 = vector.broadcast %cst_94 : f32 to vector<16x1xf32>
      %220 = arith.divf %218, %219 : vector<16x1xf32>
      %cst_95 = arith.constant 9.99999996E-13 : f32
      %221 = vector.broadcast %cst_95 : f32 to vector<16x1xf32>
      %222 = arith.addf %220, %221 : vector<16x1xf32>
      %223 = math.rsqrt %222 : vector<16x1xf32>
      %224 = vector.broadcast %223 : vector<16x1xf32> to vector<16x32xf32>
      %225 = arith.mulf %215, %224 : vector<16x32xf32>
      %226 = vector.broadcast %208 : vector<1x32xf32> to vector<16x32xf32>
      %227 = arith.mulf %225, %226 : vector<16x32xf32>
      %228 = vector.broadcast %209 : vector<1x32xf32> to vector<16x32xf32>
      %229 = arith.addf %227, %228 : vector<16x32xf32>
      %c0_96 = arith.constant 0 : index
      %c0_97 = arith.constant 0 : index
      %230 = vector.load %arg18[%c0_96, %c0_97] : memref<16x32xf32, #tpu.memory_space<vmem>>, vector<16x32xf32>
      tpu.vector_store %arg18[%c0_96, %c0_97], %229 {strides = array<i32>} : memref<16x32xf32, #tpu.memory_space<vmem>>, vector<16x32xf32>,
    } else {
    }
    %c0 = arith.constant 0 : index
    %c0_1 = arith.constant 0 : index
    %3 = vector.load %arg18[%c0, %c0_1] : memref<16x32xf32, #tpu.memory_space<vmem>>, vector<16x32xf32>
    %c0_2 = arith.constant 0 : index
    %c0_3 = arith.constant 0 : index
    %c0_4 = arith.constant 0 : index
    %4 = vector.load %arg5[%c0_2, %c0_3, %c0_4] : memref<1x32x96xf32, #tpu.memory_space<vmem>>, vector<1x32x96xf32>
    %5 = vector.shape_cast %4 : vector<1x32x96xf32> to vector<32x96xf32>
    %6 = arith.truncf %3 : vector<16x32xf32> to vector<16x32xbf16>
    %7 = arith.truncf %5 : vector<32x96xf32> to vector<32x96xbf16>
    %cst = arith.constant dense<0.000000e+00> : vector<16x96xf32>
    %8 = tpu.matmul %6, %7, %cst {dimension_numbers = #tpu.dot_dimension_numbers<[1], [0], [0], [1], [0, 0, 1, 1], [], []>} : vector<16x32xbf16>, vector<32x96xbf16>, vector<16x96xf32> -> vector<16x96xf32>
    %c0_5 = arith.constant 0 : index
    %c0_6 = arith.constant 0 : index
    %c0_7 = arith.constant 0 : index
    %9 = vector.load %arg6[%c0_5, %c0_6, %c0_7] : memref<1x1x96xf32, #tpu.memory_space<vmem>>, vector<1x1x96xf32>
    %10 = vector.shape_cast %9 : vector<1x1x96xf32> to vector<1x96xf32>
    %11 = vector.broadcast %10 : vector<1x96xf32> to vector<16x96xf32>
    %12 = arith.addf %8, %11 : vector<16x96xf32>
    %13 = vector.shape_cast %12 : vector<16x96xf32> to vector<2x8x96xf32>
    %c0_8 = arith.constant 0 : index
    %c0_9 = arith.constant 0 : index
    %14 = vector.load %arg2[%c0_8, %c0_9] : memref<2x8xf32, #tpu.memory_space<vmem>>, vector<2x8xf32>
    %cst_10 = arith.constant 1.000000e+00 : f32
    %15 = vector.broadcast %cst_10 : f32 to vector<2x8xf32>
    %16 = arith.subf %15, %14 : vector<2x8xf32>
    %cst_11 = arith.constant -1.000000e+09 : f32
    %17 = vector.broadcast %cst_11 : f32 to vector<2x8xf32>
    %18 = arith.mulf %16, %17 : vector<2x8xf32>
    %19 = vector.shape_cast %18 : vector<2x8xf32> to vector<2x1x8xf32>
    %20 = vector.extract_strided_slice %13 {offsets = [0, 0, 0], sizes = [2, 8, 8], strides = [1, 1, 1]} : vector<2x8x96xf32> to vector<2x8x8xf32>
    %21 = vector.extract_strided_slice %13 {offsets = [0, 0, 32], sizes = [2, 8, 8], strides = [1, 1, 1]} : vector<2x8x96xf32> to vector<2x8x8xf32>
    %22 = vector.extract_strided_slice %13 {offsets = [0, 0, 64], sizes = [2, 8, 8], strides = [1, 1, 1]} : vector<2x8x96xf32> to vector<2x8x8xf32>
    %23 = arith.truncf %20 : vector<2x8x8xf32> to vector<2x8x8xbf16>
    %24 = arith.truncf %21 : vector<2x8x8xf32> to vector<2x8x8xbf16>
    "tpu.trace_start"() <{level = 10 : i32, message = "bqd,bkd->bqk"}> : () -> ()
    %cst_12 = arith.constant dense<0.000000e+00> : vector<2x8x8xf32>
    %25 = tpu.matmul %23, %24, %cst_12 {dimension_numbers = #tpu.dot_dimension_numbers<[2], [2], [1], [1], [0, 0, 0, 1, 1, 1], [0], [0]>} : vector<2x8x8xbf16>, vector<2x8x8xbf16>, vector<2x8x8xf32> -> vector<2x8x8xf32>
    "tpu.trace_stop"() : () -> ()
    %26 = vector.broadcast %19 : vector<2x1x8xf32> to vector<2x8x8xf32>
    %27 = arith.addf %25, %26 : vector<2x8x8xf32>
    %cst_13 = arith.constant dense<0xFF800000> : vector<2x8xf32>
    %28 = vector.multi_reduction <maximumf>, %27, %cst_13 [2] : vector<2x8x8xf32> to vector<2x8xf32>
    %29 = vector.shape_cast %28 : vector<2x8xf32> to vector<2x8x1xf32>
    %30 = vector.broadcast %29 : vector<2x8x1xf32> to vector<2x8x8xf32>
    %31 = arith.subf %27, %30 : vector<2x8x8xf32>
    %32 = math.exp %31 : vector<2x8x8xf32>
    %cst_14 = arith.constant dense<0.000000e+00> : vector<2x8xf32>
    %33 = vector.multi_reduction <add>, %32, %cst_14 [2] : vector<2x8x8xf32> to vector<2x8xf32>
    %34 = vector.shape_cast %33 : vector<2x8xf32> to vector<2x8x1xf32>
    %35 = tpu.reciprocal %34 {approx = true} : vector<2x8x1xf32> -> vector<2x8x1xf32>
    %36 = vector.broadcast %35 : vector<2x8x1xf32> to vector<2x8x8xf32>
    %37 = arith.mulf %32, %36 : vector<2x8x8xf32>
    %38 = arith.truncf %37 : vector<2x8x8xf32> to vector<2x8x8xbf16>
    %39 = arith.truncf %22 : vector<2x8x8xf32> to vector<2x8x8xbf16>
    "tpu.trace_start"() <{level = 10 : i32, message = "bqk,bkd->bqd"}> : () -> ()
    %cst_15 = arith.constant dense<0.000000e+00> : vector<2x8x8xf32>
    %40 = tpu.matmul %38, %39, %cst_15 {dimension_numbers = #tpu.dot_dimension_numbers<[2], [1], [1], [2], [0, 0, 0, 1, 1, 2], [0], [0]>} : vector<2x8x8xbf16>, vector<2x8x8xbf16>, vector<2x8x8xf32> -> vector<2x8x8xf32>
    "tpu.trace_stop"() : () -> ()
    %41 = vector.shape_cast %40 : vector<2x8x8xf32> to vector<16x8xf32>
    %c0_16 = arith.constant 0 : index
    %c0_17 = arith.constant 0 : index
    %42 = vector.load %arg19[%c0_16, %c0_17] : memref<16x32xf32, #tpu.memory_space<vmem>>, vector<16x8xf32>
    tpu.vector_store %arg19[%c0_16, %c0_17], %41 {strides = array<i32>} : memref<16x32xf32, #tpu.memory_space<vmem>>, vector<16x8xf32>,
    %43 = vector.extract_strided_slice %13 {offsets = [0, 0, 8], sizes = [2, 8, 8], strides = [1, 1, 1]} : vector<2x8x96xf32> to vector<2x8x8xf32>
    %44 = vector.extract_strided_slice %13 {offsets = [0, 0, 40], sizes = [2, 8, 8], strides = [1, 1, 1]} : vector<2x8x96xf32> to vector<2x8x8xf32>
    %45 = vector.extract_strided_slice %13 {offsets = [0, 0, 72], sizes = [2, 8, 8], strides = [1, 1, 1]} : vector<2x8x96xf32> to vector<2x8x8xf32>
    %46 = arith.truncf %43 : vector<2x8x8xf32> to vector<2x8x8xbf16>
    %47 = arith.truncf %44 : vector<2x8x8xf32> to vector<2x8x8xbf16>
    "tpu.trace_start"() <{level = 10 : i32, message = "bqd,bkd->bqk"}> : () -> ()
    %cst_18 = arith.constant dense<0.000000e+00> : vector<2x8x8xf32>
    %48 = tpu.matmul %46, %47, %cst_18 {dimension_numbers = #tpu.dot_dimension_numbers<[2], [2], [1], [1], [0, 0, 0, 1, 1, 1], [0], [0]>} : vector<2x8x8xbf16>, vector<2x8x8xbf16>, vector<2x8x8xf32> -> vector<2x8x8xf32>
    "tpu.trace_stop"() : () -> ()
    %49 = vector.broadcast %19 : vector<2x1x8xf32> to vector<2x8x8xf32>
    %50 = arith.addf %48, %49 : vector<2x8x8xf32>
    %cst_19 = arith.constant dense<0xFF800000> : vector<2x8xf32>
    %51 = vector.multi_reduction <maximumf>, %50, %cst_19 [2] : vector<2x8x8xf32> to vector<2x8xf32>
    %52 = vector.shape_cast %51 : vector<2x8xf32> to vector<2x8x1xf32>
    %53 = vector.broadcast %52 : vector<2x8x1xf32> to vector<2x8x8xf32>
    %54 = arith.subf %50, %53 : vector<2x8x8xf32>
    %55 = math.exp %54 : vector<2x8x8xf32>
    %cst_20 = arith.constant dense<0.000000e+00> : vector<2x8xf32>
    %56 = vector.multi_reduction <add>, %55, %cst_20 [2] : vector<2x8x8xf32> to vector<2x8xf32>
    %57 = vector.shape_cast %56 : vector<2x8xf32> to vector<2x8x1xf32>
    %58 = tpu.reciprocal %57 {approx = true} : vector<2x8x1xf32> -> vector<2x8x1xf32>
    %59 = vector.broadcast %58 : vector<2x8x1xf32> to vector<2x8x8xf32>
    %60 = arith.mulf %55, %59 : vector<2x8x8xf32>
    %61 = arith.truncf %60 : vector<2x8x8xf32> to vector<2x8x8xbf16>
    %62 = arith.truncf %45 : vector<2x8x8xf32> to vector<2x8x8xbf16>
    "tpu.trace_start"() <{level = 10 : i32, message = "bqk,bkd->bqd"}> : () -> ()
    %cst_21 = arith.constant dense<0.000000e+00> : vector<2x8x8xf32>
    %63 = tpu.matmul %61, %62, %cst_21 {dimension_numbers = #tpu.dot_dimension_numbers<[2], [1], [1], [2], [0, 0, 0, 1, 1, 2], [0], [0]>} : vector<2x8x8xbf16>, vector<2x8x8xbf16>, vector<2x8x8xf32> -> vector<2x8x8xf32>
    "tpu.trace_stop"() : () -> ()
    %64 = vector.shape_cast %63 : vector<2x8x8xf32> to vector<16x8xf32>
    %c0_22 = arith.constant 0 : index
    %c8 = arith.constant 8 : index
    %65 = vector.load %arg19[%c0_22, %c8] : memref<16x32xf32, #tpu.memory_space<vmem>>, vector<16x8xf32>
    tpu.vector_store %arg19[%c0_22, %c8], %64 {strides = array<i32>} : memref<16x32xf32, #tpu.memory_space<vmem>>, vector<16x8xf32>,
    %66 = vector.extract_strided_slice %13 {offsets = [0, 0, 16], sizes = [2, 8, 8], strides = [1, 1, 1]} : vector<2x8x96xf32> to vector<2x8x8xf32>
    %67 = vector.extract_strided_slice %13 {offsets = [0, 0, 48], sizes = [2, 8, 8], strides = [1, 1, 1]} : vector<2x8x96xf32> to vector<2x8x8xf32>
    %68 = vector.extract_strided_slice %13 {offsets = [0, 0, 80], sizes = [2, 8, 8], strides = [1, 1, 1]} : vector<2x8x96xf32> to vector<2x8x8xf32>
    %69 = arith.truncf %66 : vector<2x8x8xf32> to vector<2x8x8xbf16>
    %70 = arith.truncf %67 : vector<2x8x8xf32> to vector<2x8x8xbf16>
    "tpu.trace_start"() <{level = 10 : i32, message = "bqd,bkd->bqk"}> : () -> ()
    %cst_23 = arith.constant dense<0.000000e+00> : vector<2x8x8xf32>
    %71 = tpu.matmul %69, %70, %cst_23 {dimension_numbers = #tpu.dot_dimension_numbers<[2], [2], [1], [1], [0, 0, 0, 1, 1, 1], [0], [0]>} : vector<2x8x8xbf16>, vector<2x8x8xbf16>, vector<2x8x8xf32> -> vector<2x8x8xf32>
    "tpu.trace_stop"() : () -> ()
    %72 = vector.broadcast %19 : vector<2x1x8xf32> to vector<2x8x8xf32>
    %73 = arith.addf %71, %72 : vector<2x8x8xf32>
    %cst_24 = arith.constant dense<0xFF800000> : vector<2x8xf32>
    %74 = vector.multi_reduction <maximumf>, %73, %cst_24 [2] : vector<2x8x8xf32> to vector<2x8xf32>
    %75 = vector.shape_cast %74 : vector<2x8xf32> to vector<2x8x1xf32>
    %76 = vector.broadcast %75 : vector<2x8x1xf32> to vector<2x8x8xf32>
    %77 = arith.subf %73, %76 : vector<2x8x8xf32>
    %78 = math.exp %77 : vector<2x8x8xf32>
    %cst_25 = arith.constant dense<0.000000e+00> : vector<2x8xf32>
    %79 = vector.multi_reduction <add>, %78, %cst_25 [2] : vector<2x8x8xf32> to vector<2x8xf32>
    %80 = vector.shape_cast %79 : vector<2x8xf32> to vector<2x8x1xf32>
    %81 = tpu.reciprocal %80 {approx = true} : vector<2x8x1xf32> -> vector<2x8x1xf32>
    %82 = vector.broadcast %81 : vector<2x8x1xf32> to vector<2x8x8xf32>
    %83 = arith.mulf %78, %82 : vector<2x8x8xf32>
    %84 = arith.truncf %83 : vector<2x8x8xf32> to vector<2x8x8xbf16>
    %85 = arith.truncf %68 : vector<2x8x8xf32> to vector<2x8x8xbf16>
    "tpu.trace_start"() <{level = 10 : i32, message = "bqk,bkd->bqd"}> : () -> ()
    %cst_26 = arith.constant dense<0.000000e+00> : vector<2x8x8xf32>
    %86 = tpu.matmul %84, %85, %cst_26 {dimension_numbers = #tpu.dot_dimension_numbers<[2], [1], [1], [2], [0, 0, 0, 1, 1, 2], [0], [0]>} : vector<2x8x8xbf16>, vector<2x8x8xbf16>, vector<2x8x8xf32> -> vector<2x8x8xf32>
    "tpu.trace_stop"() : () -> ()
    %87 = vector.shape_cast %86 : vector<2x8x8xf32> to vector<16x8xf32>
    %c0_27 = arith.constant 0 : index
    %c16 = arith.constant 16 : index
    %88 = vector.load %arg19[%c0_27, %c16] : memref<16x32xf32, #tpu.memory_space<vmem>>, vector<16x8xf32>
    tpu.vector_store %arg19[%c0_27, %c16], %87 {strides = array<i32>} : memref<16x32xf32, #tpu.memory_space<vmem>>, vector<16x8xf32>,
    %89 = vector.extract_strided_slice %13 {offsets = [0, 0, 24], sizes = [2, 8, 8], strides = [1, 1, 1]} : vector<2x8x96xf32> to vector<2x8x8xf32>
    %90 = vector.extract_strided_slice %13 {offsets = [0, 0, 56], sizes = [2, 8, 8], strides = [1, 1, 1]} : vector<2x8x96xf32> to vector<2x8x8xf32>
    %91 = vector.extract_strided_slice %13 {offsets = [0, 0, 88], sizes = [2, 8, 8], strides = [1, 1, 1]} : vector<2x8x96xf32> to vector<2x8x8xf32>
    %92 = arith.truncf %89 : vector<2x8x8xf32> to vector<2x8x8xbf16>
    %93 = arith.truncf %90 : vector<2x8x8xf32> to vector<2x8x8xbf16>
    "tpu.trace_start"() <{level = 10 : i32, message = "bqd,bkd->bqk"}> : () -> ()
    %cst_28 = arith.constant dense<0.000000e+00> : vector<2x8x8xf32>
    %94 = tpu.matmul %92, %93, %cst_28 {dimension_numbers = #tpu.dot_dimension_numbers<[2], [2], [1], [1], [0, 0, 0, 1, 1, 1], [0], [0]>} : vector<2x8x8xbf16>, vector<2x8x8xbf16>, vector<2x8x8xf32> -> vector<2x8x8xf32>
    "tpu.trace_stop"() : () -> ()
    %95 = vector.broadcast %19 : vector<2x1x8xf32> to vector<2x8x8xf32>
    %96 = arith.addf %94, %95 : vector<2x8x8xf32>
    %cst_29 = arith.constant dense<0xFF800000> : vector<2x8xf32>
    %97 = vector.multi_reduction <maximumf>, %96, %cst_29 [2] : vector<2x8x8xf32> to vector<2x8xf32>
    %98 = vector.shape_cast %97 : vector<2x8xf32> to vector<2x8x1xf32>
    %99 = vector.broadcast %98 : vector<2x8x1xf32> to vector<2x8x8xf32>
    %100 = arith.subf %96, %99 : vector<2x8x8xf32>
    %101 = math.exp %100 : vector<2x8x8xf32>
    %cst_30 = arith.constant dense<0.000000e+00> : vector<2x8xf32>
    %102 = vector.multi_reduction <add>, %101, %cst_30 [2] : vector<2x8x8xf32> to vector<2x8xf32>
    %103 = vector.shape_cast %102 : vector<2x8xf32> to vector<2x8x1xf32>
    %104 = tpu.reciprocal %103 {approx = true} : vector<2x8x1xf32> -> vector<2x8x1xf32>
    %105 = vector.broadcast %104 : vector<2x8x1xf32> to vector<2x8x8xf32>
    %106 = arith.mulf %101, %105 : vector<2x8x8xf32>
    %107 = arith.truncf %106 : vector<2x8x8xf32> to vector<2x8x8xbf16>
    %108 = arith.truncf %91 : vector<2x8x8xf32> to vector<2x8x8xbf16>
    "tpu.trace_start"() <{level = 10 : i32, message = "bqk,bkd->bqd"}> : () -> ()
    %cst_31 = arith.constant dense<0.000000e+00> : vector<2x8x8xf32>
    %109 = tpu.matmul %107, %108, %cst_31 {dimension_numbers = #tpu.dot_dimension_numbers<[2], [1], [1], [2], [0, 0, 0, 1, 1, 2], [0], [0]>} : vector<2x8x8xbf16>, vector<2x8x8xbf16>, vector<2x8x8xf32> -> vector<2x8x8xf32>
    "tpu.trace_stop"() : () -> ()
    %110 = vector.shape_cast %109 : vector<2x8x8xf32> to vector<16x8xf32>
    %c0_32 = arith.constant 0 : index
    %c24 = arith.constant 24 : index
    %111 = vector.load %arg19[%c0_32, %c24] : memref<16x32xf32, #tpu.memory_space<vmem>>, vector<16x8xf32>
    tpu.vector_store %arg19[%c0_32, %c24], %110 {strides = array<i32>} : memref<16x32xf32, #tpu.memory_space<vmem>>, vector<16x8xf32>,
    %c0_33 = arith.constant 0 : index
    %c0_34 = arith.constant 0 : index
    %112 = vector.load %arg19[%c0_33, %c0_34] : memref<16x32xf32, #tpu.memory_space<vmem>>, vector<16x32xf32>
    %c0_35 = arith.constant 0 : index
    %c0_36 = arith.constant 0 : index
    %c0_37 = arith.constant 0 : index
    %113 = vector.load %arg7[%c0_35, %c0_36, %c0_37] : memref<1x32x32xf32, #tpu.memory_space<vmem>>, vector<1x32x32xf32>
    %114 = vector.shape_cast %113 : vector<1x32x32xf32> to vector<32x32xf32>
    %115 = arith.truncf %112 : vector<16x32xf32> to vector<16x32xbf16>
    %116 = arith.truncf %114 : vector<32x32xf32> to vector<32x32xbf16>
    %cst_38 = arith.constant dense<0.000000e+00> : vector<16x32xf32>
    %117 = tpu.matmul %115, %116, %cst_38 {dimension_numbers = #tpu.dot_dimension_numbers<[1], [0], [0], [1], [0, 0, 1, 1], [], []>} : vector<16x32xbf16>, vector<32x32xbf16>, vector<16x32xf32> -> vector<16x32xf32>
    %c0_39 = arith.constant 0 : index
    %c0_40 = arith.constant 0 : index
    %c0_41 = arith.constant 0 : index
    %118 = vector.load %arg8[%c0_39, %c0_40, %c0_41] : memref<1x1x32xf32, #tpu.memory_space<vmem>>, vector<1x1x32xf32>
    %119 = vector.shape_cast %118 : vector<1x1x32xf32> to vector<1x32xf32>
    %120 = vector.broadcast %119 : vector<1x32xf32> to vector<16x32xf32>
    %121 = arith.addf %117, %120 : vector<16x32xf32>
    %122 = arith.addf %121, %3 : vector<16x32xf32>
    %c0_42 = arith.constant 0 : index
    %c0_43 = arith.constant 0 : index
    %c0_44 = arith.constant 0 : index
    %123 = vector.load %arg9[%c0_42, %c0_43, %c0_44] : memref<1x1x32xf32, #tpu.memory_space<vmem>>, vector<1x1x32xf32>
    %124 = vector.shape_cast %123 : vector<1x1x32xf32> to vector<1x32xf32>
    %c0_45 = arith.constant 0 : index
    %c0_46 = arith.constant 0 : index
    %c0_47 = arith.constant 0 : index
    %125 = vector.load %arg10[%c0_45, %c0_46, %c0_47] : memref<1x1x32xf32, #tpu.memory_space<vmem>>, vector<1x1x32xf32>
    %126 = vector.shape_cast %125 : vector<1x1x32xf32> to vector<1x32xf32>
    %cst_48 = arith.constant dense<0.000000e+00> : vector<16xf32>
    %127 = vector.multi_reduction <add>, %122, %cst_48 [1] : vector<16x32xf32> to vector<16xf32>
    %128 = vector.shape_cast %127 : vector<16xf32> to vector<16x1xf32>
    %cst_49 = arith.constant 3.200000e+01 : f32
    %129 = vector.broadcast %cst_49 : f32 to vector<16x1xf32>
    %130 = arith.divf %128, %129 : vector<16x1xf32>
    %131 = vector.broadcast %130 : vector<16x1xf32> to vector<16x32xf32>
    %132 = arith.subf %122, %131 : vector<16x32xf32>
    %133 = arith.mulf %132, %132 : vector<16x32xf32>
    %cst_50 = arith.constant dense<0.000000e+00> : vector<16xf32>
    %134 = vector.multi_reduction <add>, %133, %cst_50 [1] : vector<16x32xf32> to vector<16xf32>
    %135 = vector.shape_cast %134 : vector<16xf32> to vector<16x1xf32>
    %cst_51 = arith.constant 3.200000e+01 : f32
    %136 = vector.broadcast %cst_51 : f32 to vector<16x1xf32>
    %137 = arith.divf %135, %136 : vector<16x1xf32>
    %cst_52 = arith.constant 9.99999996E-13 : f32
    %138 = vector.broadcast %cst_52 : f32 to vector<16x1xf32>
    %139 = arith.addf %137, %138 : vector<16x1xf32>
    %140 = math.rsqrt %139 : vector<16x1xf32>
    %141 = vector.broadcast %140 : vector<16x1xf32> to vector<16x32xf32>
    %142 = arith.mulf %132, %141 : vector<16x32xf32>
    %143 = vector.broadcast %124 : vector<1x32xf32> to vector<16x32xf32>
    %144 = arith.mulf %142, %143 : vector<16x32xf32>
    %145 = vector.broadcast %126 : vector<1x32xf32> to vector<16x32xf32>
    %146 = arith.addf %144, %145 : vector<16x32xf32>
    %c0_53 = arith.constant 0 : index
    %c0_54 = arith.constant 0 : index
    %c0_55 = arith.constant 0 : index
    %147 = vector.load %arg11[%c0_53, %c0_54, %c0_55] : memref<1x32x64xf32, #tpu.memory_space<vmem>>, vector<1x32x64xf32>
    %148 = vector.shape_cast %147 : vector<1x32x64xf32> to vector<32x64xf32>
    %149 = arith.truncf %146 : vector<16x32xf32> to vector<16x32xbf16>
    %150 = arith.truncf %148 : vector<32x64xf32> to vector<32x64xbf16>
    %cst_56 = arith.constant dense<0.000000e+00> : vector<16x64xf32>
    %151 = tpu.matmul %149, %150, %cst_56 {dimension_numbers = #tpu.dot_dimension_numbers<[1], [0], [0], [1], [0, 0, 1, 1], [], []>} : vector<16x32xbf16>, vector<32x64xbf16>, vector<16x64xf32> -> vector<16x64xf32>
    %c0_57 = arith.constant 0 : index
    %c0_58 = arith.constant 0 : index
    %c0_59 = arith.constant 0 : index
    %152 = vector.load %arg12[%c0_57, %c0_58, %c0_59] : memref<1x1x64xf32, #tpu.memory_space<vmem>>, vector<1x1x64xf32>
    %153 = vector.shape_cast %152 : vector<1x1x64xf32> to vector<1x64xf32>
    %154 = vector.broadcast %153 : vector<1x64xf32> to vector<16x64xf32>
    %155 = arith.addf %151, %154 : vector<16x64xf32>
    %cst_60 = arith.constant 5.000000e-01 : f32
    %156 = vector.broadcast %cst_60 : f32 to vector<16x64xf32>
    %157 = arith.mulf %156, %155 : vector<16x64xf32>
    %cst_61 = arith.constant 4.471500e-02 : f32
    %158 = vector.broadcast %cst_61 : f32 to vector<16x64xf32>
    %159 = arith.mulf %158, %155 : vector<16x64xf32>
    %160 = arith.mulf %159, %155 : vector<16x64xf32>
    %161 = arith.mulf %160, %155 : vector<16x64xf32>
    %162 = arith.addf %155, %161 : vector<16x64xf32>
    %cst_62 = arith.constant 0.797884583 : f32
    %163 = vector.broadcast %cst_62 : f32 to vector<16x64xf32>
    %164 = arith.mulf %163, %162 : vector<16x64xf32>
    %165 = math.tanh %164 : vector<16x64xf32>
    %cst_63 = arith.constant 1.000000e+00 : f32
    %166 = vector.broadcast %cst_63 : f32 to vector<16x64xf32>
    %167 = arith.addf %166, %165 : vector<16x64xf32>
    %168 = arith.mulf %157, %167 : vector<16x64xf32>
    %c0_64 = arith.constant 0 : index
    %c0_65 = arith.constant 0 : index
    %c0_66 = arith.constant 0 : index
    %169 = vector.load %arg13[%c0_64, %c0_65, %c0_66] : memref<1x64x32xf32, #tpu.memory_space<vmem>>, vector<1x64x32xf32>
    %170 = vector.shape_cast %169 : vector<1x64x32xf32> to vector<64x32xf32>
    %171 = arith.truncf %168 : vector<16x64xf32> to vector<16x64xbf16>
    %172 = arith.truncf %170 : vector<64x32xf32> to vector<64x32xbf16>
    %cst_67 = arith.constant dense<0.000000e+00> : vector<16x32xf32>
    %173 = tpu.matmul %171, %172, %cst_67 {dimension_numbers = #tpu.dot_dimension_numbers<[1], [0], [0], [1], [0, 0, 1, 1], [], []>} : vector<16x64xbf16>, vector<64x32xbf16>, vector<16x32xf32> -> vector<16x32xf32>
    %c0_68 = arith.constant 0 : index
    %c0_69 = arith.constant 0 : index
    %c0_70 = arith.constant 0 : index
    %174 = vector.load %arg14[%c0_68, %c0_69, %c0_70] : memref<1x1x32xf32, #tpu.memory_space<vmem>>, vector<1x1x32xf32>
    %175 = vector.shape_cast %174 : vector<1x1x32xf32> to vector<1x32xf32>
    %176 = vector.broadcast %175 : vector<1x32xf32> to vector<16x32xf32>
    %177 = arith.addf %173, %176 : vector<16x32xf32>
    %178 = arith.addf %177, %146 : vector<16x32xf32>
    %c0_71 = arith.constant 0 : index
    %c0_72 = arith.constant 0 : index
    %c0_73 = arith.constant 0 : index
    %179 = vector.load %arg15[%c0_71, %c0_72, %c0_73] : memref<1x1x32xf32, #tpu.memory_space<vmem>>, vector<1x1x32xf32>
    %180 = vector.shape_cast %179 : vector<1x1x32xf32> to vector<1x32xf32>
    %c0_74 = arith.constant 0 : index
    %c0_75 = arith.constant 0 : index
    %c0_76 = arith.constant 0 : index
    %181 = vector.load %arg16[%c0_74, %c0_75, %c0_76] : memref<1x1x32xf32, #tpu.memory_space<vmem>>, vector<1x1x32xf32>
    %182 = vector.shape_cast %181 : vector<1x1x32xf32> to vector<1x32xf32>
    %cst_77 = arith.constant dense<0.000000e+00> : vector<16xf32>
    %183 = vector.multi_reduction <add>, %178, %cst_77 [1] : vector<16x32xf32> to vector<16xf32>
    %184 = vector.shape_cast %183 : vector<16xf32> to vector<16x1xf32>
    %cst_78 = arith.constant 3.200000e+01 : f32
    %185 = vector.broadcast %cst_78 : f32 to vector<16x1xf32>
    %186 = arith.divf %184, %185 : vector<16x1xf32>
    %187 = vector.broadcast %186 : vector<16x1xf32> to vector<16x32xf32>
    %188 = arith.subf %178, %187 : vector<16x32xf32>
    %189 = arith.mulf %188, %188 : vector<16x32xf32>
    %cst_79 = arith.constant dense<0.000000e+00> : vector<16xf32>
    %190 = vector.multi_reduction <add>, %189, %cst_79 [1] : vector<16x32xf32> to vector<16xf32>
    %191 = vector.shape_cast %190 : vector<16xf32> to vector<16x1xf32>
    %cst_80 = arith.constant 3.200000e+01 : f32
    %192 = vector.broadcast %cst_80 : f32 to vector<16x1xf32>
    %193 = arith.divf %191, %192 : vector<16x1xf32>
    %cst_81 = arith.constant 9.99999996E-13 : f32
    %194 = vector.broadcast %cst_81 : f32 to vector<16x1xf32>
    %195 = arith.addf %193, %194 : vector<16x1xf32>
    %196 = math.rsqrt %195 : vector<16x1xf32>
    %197 = vector.broadcast %196 : vector<16x1xf32> to vector<16x32xf32>
    %198 = arith.mulf %188, %197 : vector<16x32xf32>
    %199 = vector.broadcast %180 : vector<1x32xf32> to vector<16x32xf32>
    %200 = arith.mulf %198, %199 : vector<16x32xf32>
    %201 = vector.broadcast %182 : vector<1x32xf32> to vector<16x32xf32>
    %202 = arith.addf %200, %201 : vector<16x32xf32>
    %c0_82 = arith.constant 0 : index
    %c0_83 = arith.constant 0 : index
    %203 = vector.load %arg18[%c0_82, %c0_83] : memref<16x32xf32, #tpu.memory_space<vmem>>, vector<16x32xf32>
    tpu.vector_store %arg18[%c0_82, %c0_83], %202 {strides = array<i32>} : memref<16x32xf32, #tpu.memory_space<vmem>>, vector<16x32xf32>,
    %c1_i32 = arith.constant 1 : i32
    %204 = arith.cmpi eq, %arg0, %c1_i32 : i32
    %205 = arith.extui %204 : i1 to i32
    %c0_i32_84 = arith.constant 0 : i32
    %206 = arith.cmpi ne, %205, %c0_i32_84 : i32
    scf.if %206 {
      %c0_85 = arith.constant 0 : index
      %c0_86 = arith.constant 0 : index
      %207 = vector.load %arg17[%c0_85, %c0_86] : memref<16x32xf32, #tpu.memory_space<vmem>>, vector<16x32xf32>
      tpu.vector_store %arg17[%c0_85, %c0_86], %202 {strides = array<i32>} : memref<16x32xf32, #tpu.memory_space<vmem>>, vector<16x32xf32>,
    } else {
    }
    return
  }
  func.func @transform_0(%arg0: i32) -> (i32, i32) {
    %c0_i32 = arith.constant 0 : i32
    %c0_i32_0 = arith.constant 0 : i32
    %c0_i32_1 = arith.constant 0 : i32
    return %c0_i32, %c0_i32_0 : i32, i32
  }
  func.func @transform_1(%arg0: i32) -> (i32, i32) {
    %c0_i32 = arith.constant 0 : i32
    %c0_i32_0 = arith.constant 0 : i32
    %c0_i32_1 = arith.constant 0 : i32
    return %c0_i32, %c0_i32_0 : i32, i32
  }
  func.func @transform_2(%arg0: i32) -> (i32, i32) {
    %c0_i32 = arith.constant 0 : i32
    %c0_i32_0 = arith.constant 0 : i32
    %c0_i32_1 = arith.constant 0 : i32
    return %c0_i32, %c0_i32_0 : i32, i32
  }
  func.func @transform_3(%arg0: i32) -> (i32, i32) {
    %c0_i32 = arith.constant 0 : i32
    %c0_i32_0 = arith.constant 0 : i32
    %c0_i32_1 = arith.constant 0 : i32
    return %c0_i32, %c0_i32_0 : i32, i32
  }
  func.func @transform_4(%arg0: i32) -> (i32, i32, i32) {
    %c0_i32 = arith.constant 0 : i32
    %c0_i32_0 = arith.constant 0 : i32
    %c0_i32_1 = arith.constant 0 : i32
    return %arg0, %c0_i32, %c0_i32_0 : i32, i32, i32
  }
  func.func @transform_5(%arg0: i32) -> (i32, i32, i32) {
    %c0_i32 = arith.constant 0 : i32
    %c0_i32_0 = arith.constant 0 : i32
    %c0_i32_1 = arith.constant 0 : i32
    return %arg0, %c0_i32, %c0_i32_0 : i32, i32, i32
  }
  func.func @transform_6(%arg0: i32) -> (i32, i32, i32) {
    %c0_i32 = arith.constant 0 : i32
    %c0_i32_0 = arith.constant 0 : i32
    %c0_i32_1 = arith.constant 0 : i32
    return %arg0, %c0_i32, %c0_i32_0 : i32, i32, i32
  }
  func.func @transform_7(%arg0: i32) -> (i32, i32, i32) {
    %c0_i32 = arith.constant 0 : i32
    %c0_i32_0 = arith.constant 0 : i32
    %c0_i32_1 = arith.constant 0 : i32
    return %arg0, %c0_i32, %c0_i32_0 : i32, i32, i32
  }
  func.func @transform_8(%arg0: i32) -> (i32, i32, i32) {
    %c0_i32 = arith.constant 0 : i32
    %c0_i32_0 = arith.constant 0 : i32
    %c0_i32_1 = arith.constant 0 : i32
    return %arg0, %c0_i32, %c0_i32_0 : i32, i32, i32
  }
  func.func @transform_9(%arg0: i32) -> (i32, i32, i32) {
    %c0_i32 = arith.constant 0 : i32
    %c0_i32_0 = arith.constant 0 : i32
    %c0_i32_1 = arith.constant 0 : i32
    return %arg0, %c0_i32, %c0_i32_0 : i32, i32, i32
  }
  func.func @transform_10(%arg0: i32) -> (i32, i32, i32) {
    %c0_i32 = arith.constant 0 : i32
    %c0_i32_0 = arith.constant 0 : i32
    %c0_i32_1 = arith.constant 0 : i32
    return %arg0, %c0_i32, %c0_i32_0 : i32, i32, i32
  }
  func.func @transform_11(%arg0: i32) -> (i32, i32, i32) {
    %c0_i32 = arith.constant 0 : i32
    %c0_i32_0 = arith.constant 0 : i32
    %c0_i32_1 = arith.constant 0 : i32
    return %arg0, %c0_i32, %c0_i32_0 : i32, i32, i32
  }
  func.func @transform_12(%arg0: i32) -> (i32, i32, i32) {
    %c0_i32 = arith.constant 0 : i32
    %c0_i32_0 = arith.constant 0 : i32
    %c0_i32_1 = arith.constant 0 : i32
    return %arg0, %c0_i32, %c0_i32_0 : i32, i32, i32
  }
  func.func @transform_13(%arg0: i32) -> (i32, i32, i32) {
    %c0_i32 = arith.constant 0 : i32
    %c0_i32_0 = arith.constant 0 : i32
    %c0_i32_1 = arith.constant 0 : i32
    return %arg0, %c0_i32, %c0_i32_0 : i32, i32, i32
  }
  func.func @transform_14(%arg0: i32) -> (i32, i32, i32) {
    %c0_i32 = arith.constant 0 : i32
    %c0_i32_0 = arith.constant 0 : i32
    %c0_i32_1 = arith.constant 0 : i32
    return %arg0, %c0_i32, %c0_i32_0 : i32, i32, i32
  }
  func.func @transform_15(%arg0: i32) -> (i32, i32, i32) {
    %c0_i32 = arith.constant 0 : i32
    %c0_i32_0 = arith.constant 0 : i32
    %c0_i32_1 = arith.constant 0 : i32
    return %arg0, %c0_i32, %c0_i32_0 : i32, i32, i32
  }
  func.func @transform_16(%arg0: i32) -> (i32, i32) {
    %c0_i32 = arith.constant 0 : i32
    %c0_i32_0 = arith.constant 0 : i32
    %c0_i32_1 = arith.constant 0 : i32
    return %c0_i32, %c0_i32_0 : i32, i32
  }
}

</mosaic_0001>

<bundles_post_ra>
// kernel: bert_encode.1
= control target key start
LH: loop header
LB: loop body
LE: loop exit
PB: predicated region body
PF: predicated region fallthrough
CT: control target
= control target key end

     0   :  { %s3029_s0 = inlined_call_operand.vmem [shape: f32[16,32], index: 0, kind: input, shape index: {}]   ;;  %s3030_s1 = inlined_call_operand.vmem [shape: f32[2,8], index: 1, kind: input, shape index: {}]   ;;  %s3031_s2 = inlined_call_operand.vmem [shape: f32[1,32], index: 2, kind: input, shape index: {}]   ;;  %s3032_s3 = inlined_call_operand.vmem [shape: f32[1,32], index: 3, kind: input, shape index: {}]   ;;  %s3033_s4 = inlined_call_operand.vmem [shape: f32[2,32,96], index: 4, kind: input, shape index: {}]   ;;  %s3034_s5 = inlined_call_operand.vmem [shape: f32[2,1,96], index: 5, kind: input, shape index: {}]   ;;  %s3035_s6 = inlined_call_operand.vmem [shape: f32[2,32,32], index: 6, kind: input, shape index: {}]   ;;  %s3036_s7 = inlined_call_operand.vmem [shape: f32[2,1,32], index: 7, kind: input, shape index: {}]   ;;  %s3037_s8 = inlined_call_operand.vmem [shape: f32[2,1,32], index: 8, kind: input, shape index: {}]   ;;  %s3038_s9 = inlined_call_operand.vmem [shape: f32[2,1,32], index: 9, kind: input, shape index: {}]   ;;  %s3039_s10 = inlined_call_operand.vmem [shape: f32[2,32,64], index: 10, kind: input, shape index: {}]   ;;  %s3040_s11 = inlined_call_operand.vmem [shape: f32[2,1,64], index: 11, kind: input, shape index: {}]   ;;  %s3041_s12 = inlined_call_operand.vmem [shape: f32[2,64,32], index: 12, kind: input, shape index: {}]   ;;  %s3042_s13 = inlined_call_operand.vmem [shape: f32[2,1,32], index: 13, kind: input, shape index: {}]   ;;  %s3043_s14 = inlined_call_operand.vmem [shape: f32[2,1,32], index: 14, kind: input, shape index: {}]   ;;  %s3044_s15 = inlined_call_operand.vmem [shape: f32[2,1,32], index: 15, kind: input, shape index: {}]   ;;  %s3045_s16 = inlined_call_operand.hbm [shape: f32[16,32], index: 16, kind: output, shape index: {}]  }
   0x1   :  { %3050 = sst [smem:[#allocation9_spill]] %s3029_s0 }
   0x2   :  { %3051 = sst [smem:[#allocation10_spill]] %s3030_s1 }
   0x3   :  { %3052 = sst [smem:[#allocation11_spill]] %s3032_s3 }
   0x4   :  { %3053 = sst [smem:[#allocation12_spill]] %s3033_s4 }
   0x5   :  { %3054 = sst [smem:[#allocation13_spill]] %s3035_s6 }
   0x6   :  { %3055 = sst [smem:[#allocation14_spill]] %s3045_s16 }
   0x7   :  { %21 = vsyncpa [#allocation5], 0  ;;  %s2660_s21 = smov 0  }
   0x8 LB: > { %3056 = sst [smem:[#allocation7_spill]] %s2554_s21  ;;  %s2666_s22 = sadd.s32 4294967295, %s2554_s21   ;;  %s2554_s21 = sphi %s2660_s21, %s27_s21  }
   0x9   : > { %p2210_p0 = scmp.ge.s32.totalorder %s2554_s21, 1  ;;  %p552_p1 = scmp.lt.s32.totalorder %s2554_s21, 3 }
   0xb   : > { %p553_p2 = pnand %p2210_p0, %p552_p1 }
   0xd   : > { %556 = sbr.rel (%p553_p2) target bundleno = 4524 (0x11ac), region = 84 }
  0x14   : > { %p636_p3 = scmp.lt.s32.totalorder %s2666_s22, 1  ;;  %s3057_s4 = sld [smem:[#allocation12_spill]] }
  0x15   : > { %s3058_s6 = sld [smem:[#allocation13_spill]]  ;;  %p2219_p4 = scmp.ne.s32.totalorder %s2666_s22, 0 }
  0x16   : > { %s2672_s23 = scalar_select %p636_p3, %s2666_s22, 1 }
  0x17   : > { %684 = sbr.rel (%p2219_p4) target bundleno = 348 (0x15c), region = 88  ;;  %s3060_s19 = sld [smem:[#allocation9_spill]] (!%p2219_p4)  ;;  %vm689_vm0 = vcmask (!%p2219_p4), 261120   ;;  %v2220_v21 = vld [vmem:[%s3031_s2] ss:$0 sm:$0xff] (!%p2219_p4) }
  0x18   : > { %s2255_s24 = sshll.u32 %s2672_s23, 5  ;;  %s673_s25 = scalar_lea.vmem %s3042_s13, %s2672_s23 }
  0x19   : > { %s676_s28 = scalar_lea.vmem %s3043_s14, %s2672_s23  ;;  %s679_s3 = scalar_lea.vmem %s3044_s15, %s2672_s23 }
  0x1a   : > { %s2682_s30 = scalar_lea.vmem %s3057_s4, %s2255_s24  ;;  %s2704_s4 = scalar_lea.vmem %s3039_s10, %s2255_s24 }
  0x1b   : > { %s2687_s18 = scalar_lea.vmem %s3058_s6, %s2255_s24  ;;  %s665_s6 = scalar_lea.vmem %s3040_s11, %s2672_s23 }
  0x1c   : > { %3059 = sst [smem:[#allocation8_spill]] %s2687_s18  ;;  %s2258_s18 = sshll.u32 %s2672_s23, 6 }
  0x1d   : > { %s2714_s21 = scalar_lea.vmem %s3041_s12, %s2258_s18  ;;  %v685_v0 = vld [vmem:[%s3060_s19] sm:$0xff] (!%p2219_p4)  ;;  %v686_v1 = vld [vmem:[%s3060_s19 + $0x8] sm:$0xff] (!%p2219_p4)  ;;  %s3061_s24 = sld [smem:[#allocation11_spill]] (!%p2219_p4) }
  0x1e   : > { %v690_v2 = vsel %vm689_vm0, %v685_v0, 0.0  ;;  %v693_v3 = vsel %vm689_vm0, %v686_v1, 0.0 }
  0x1f   : > { %691 = vadd.xlane.f32.xlu0 %v690_v2 }
  0x23   : > { %694 = vadd.xlane.f32.xlu0 %v693_v3  ;;  %v2221_v23 = vld [vmem:[%s3061_s24] ss:$0 sm:$0xff] }
  0xac   : > { %v692_v4 = vpop.xlane.xlu0 %691 }
  0xad   : > { %v697_v5 = vmul.f32 0.03125, %v692_v4 }
  0xaf   : > { %v699_v6 = vsub.f32 %v685_v0, %v697_v5 }
  0xb0   : > { %v695_v7 = vpop.xlane.xlu0 %694 }
  0xb1   : > { %v698_v8 = vmul.f32 0.03125, %v695_v7  ;;  %v701_v9 = vmul.f32 %v699_v6, %v699_v6 }
  0xb3   : > { %v700_v10 = vsub.f32 %v686_v1, %v698_v8  ;;  %v703_v11 = vsel %vm689_vm0, %v701_v9, 0.0 }
  0xb4   : > { %704 = vadd.xlane.f32.xlu1 %v703_v11 }
  0xb5   : > { %v702_v12 = vmul.f32 %v700_v10, %v700_v10 }
  0xb7   : > { %v706_v13 = vsel %vm689_vm0, %v702_v12, 0.0 }
  0xb8   : > { %707 = vadd.xlane.f32.xlu1 %v706_v13 }
 0x141   : > { %v705_v14 = vpop.xlane.xlu1 %704 }
 0x142   : > { %v709_v15 = vmul.f32 0.03125, %v705_v14 }
 0x144   : > { %v711_v16 = vadd.f32 1e-12, %v709_v15 }
 0x145   : > { %v708_v17 = vpop.xlane.xlu1 %707 }
 0x146   : > { %2470 = vrsqrt.f32 %v711_v16  ;;  %v710_v18 = vmul.f32 0.03125, %v708_v17 }
 0x148   : > { %v712_v19 = vadd.f32 1e-12, %v710_v18 }
 0x14a   : > { %2472 = vrsqrt.f32 %v712_v19 }
 0x150   : > { %v2471_v20 = vpop.eup %2470 }
 0x151   : > { %v715_v22 = vmul.f32 %v2471_v20, %v699_v6 }
 0x153   : > { %v723_v24 = vmul.f32 %v2220_v21, %v715_v22 }
 0x154   : > { %v2473_v25 = vpop.eup %2472 }
 0x155   : > { %v731_v26 = vadd.f32 %v2221_v23, %v723_v24  ;;  %v716_v27 = vmul.f32 %v2473_v25, %v700_v10 }
 0x157   : > { %733 = vst.msk [vmem:[#allocation2] sm:$0xff] %vm689_vm0, %v731_v26  ;;  %v724_v28 = vmul.f32 %v2220_v21, %v716_v27 }
 0x159   : > { %v732_v29 = vadd.f32 %v2221_v23, %v724_v28 }
 0x15b   : > { %734 = vst.msk [vmem:[#allocation2 + $0x8] sm:$0xff] %vm689_vm0, %v732_v29 }
 0x15c PF: > { %v737_v30 = vld [vmem:[%s2682_s30] sm:$0xff]  ;;  %v738_v31 = vld [vmem:[%s2682_s30 + $0x8] sm:$0xff]  ;;  %v739_v32 = vld [vmem:[%s2682_s30 + $0x10] sm:$0xff]  ;;  %v2556_v33 = vmov 0.0   ;;  %vm2557_vm1 = vmmov 0   ;;  %vm751_vm2 = vcmask 261120   ;;  %s3062_s0 = scalar_lea.vmem %s3034_s5, %s2672_s23  ;;  %v803_v55 = vlaneseq }
 0x15d   : > { %2305 = vmatprep.subr.bf16.mxu0 %v2556_v33  ;;  %v742_v34 = vpack.c.bf16 %v738_v31, %v737_v30  ;;  %v740_v35 = vld [vmem:[%s2682_s30 + $0x18] sm:$0xff]  ;;  %2309 = vmatprep.mubr.msk.bf16.mxu0 %vm2557_vm1, %v2556_v33  ;;  %v2222_v40 = vld [vmem:[%s3062_s0] ss:$0 sm:$0xff]  ;;  %s2558_s17 = smov 96   ;;  %vm837_vm3 = vcmask 64512   ;;  %s3063_s27 = sld [smem:[#allocation10_spill]] }
 0x15e   : > { %2313 = vmatprep.subr.bf16.mxu1 %v2556_v33  ;;  %2315 = vmatprep.mubr.msk.bf16.mxu1 %vm2557_vm1, %v2556_v33  ;;  %v743_v36 = vpack.c.bf16 %v740_v35, %v739_v32  ;;  %v2757_v37 = vld [vmem:[#allocation2] sm:$0xff]  ;;  %v2559_v53 = vmov 1966171168   ;;  %v804_v59 = vshrl.u32 %v803_v55, 7  ;;  %s2560_s1 = smov 64   ;;  %s2561_s16 = smov 88  }
 0x15f   : > { %2306 = vmatpush3.bf16.msra.mxu0 %v742_v34  ;;  %v801_v54 = vunpack.c.l.s4 %v2559_v53  ;;  %vm962_vm4 = vcmask 1043456   ;;  %s2562_s26 = smov 120   ;;  %s2563_s24 = smov 56   ;;  %vm1284_vm5 = vcmask 130112   ;;  %vm1515_vm6 = vcmask 195712  }
 0x160   : > { %2307 = vmatprep.subr.bf16.mxu0 %v2556_v33  ;;  %v826_v0 = vsub.s32 0, %v804_v59  ;;  %s2564_s30 = smov 80   ;;  %s2565_s29 = smov 112   ;;  %vm1746_vm7 = vcmask 261312   ;;  %vm1952_vm8 = vcmask 523264  }
 0x161   : > { %v802_v58 = vunpack.c.0.s8 %v801_v54  ;;  %s2566_s0 = smov 48   ;;  %s2568_s18 = smov 104  }
 0x162   : > { %v2759_v38 = vld [vmem:[#allocation2 + $0x8] sm:$0xff]  ;;  %s2569_s20 = smov 40   ;;  %p2250_p5 = scmp.ne.s32.totalorder %s2666_s22, 1 }
 0x163   : > { %v741_v39 = vpack.c.bf16 %v2759_v38, %v2757_v37  ;;  %2308 = vmatpush3.bf16.msra.mxu0 %v743_v36  ;;  %v796_v56 = vld [vmem:[%s3063_s27] sm:$0x3]  ;;  %v805_v61 = vsub.s32 %v802_v58, %v804_v59  ;;  %s2570_s27 = smov 8  }
 0x164   : > { %2319 = vmatprep.subr.bf16.mxu0 %v2556_v33  ;;  %v797_v57 = vsub.f32 1.0, %v796_v56 }
 0x166   : > { %2310 = vmatmul.mubr.msk.bf16.vlgmr.msra.gmra.mrb[0].mxu0 %vm751_vm2, %v741_v39  ;;  %v798_v60 = vmul.f32 -1e+09, %v797_v57 }
 0x167   : > { %2321 = vmatprep.mubr.msk.bf16.mxu0 %vm2557_vm1, %v2556_v33 }
 0x168   : > { %v806_v62 = vrot.slane %v798_v60, %v805_v61 }
 0x16a   : > { %v814_v63 = vrot.slane %v806_v62, %v805_v61  ;;  %v807_v1 = vcombine.high %v806_v62, %v806_v62 }
 0x16c   : > { %v2794_v2 = vrot.slane %v814_v63, %v826_v0  ;;  %v821_v3 = vrot.slane %v807_v1, %v805_v61 }
 0x16e   : > { %v2797_v7 = vrot.slane %v821_v3, %v826_v0 }
 0x239   : > { %v789_v41 = vpop.f32.mrb[0].mxu0 }
 0x23a   : > { %v790_v42 = vadd.f32 %v2222_v40, %v789_v41  ;;  %v2311_v43 = vpop.f32.mrb[1].mxu0 }
 0x23b   : > { %v792_v44 = vpop.f32.mrb[2].mxu0 }
 0x23c   : > { %v2773_v45 = vpack.c.bf16 %v790_v42, %v790_v42  ;;  %v793_v46 = vadd.f32 %v2222_v40, %v792_v44  ;;  %v2312_v47 = vpop.f32.mrb[3].mxu0 }
 0x23e   : > { %835 = vrot.lane.b32.xlu0 %v2773_v45, %s2558_s17  ;;  %v2776_v48 = vpack.c.bf16 %v793_v46, %v793_v46 }
 0x242   : > { %885 = vrot.lane.b32.xlu0 %v2776_v48, %s2558_s17  ;;  %s2567_s17 = smov 72  }
 0x2b0   : > { %v836_v49 = vpop.permute.xlu0 %835 }
 0x2b1   : > { %v842_v50 = vsel %vm837_vm3, %v836_v49, 0 }
 0x2b2   : > { %2314 = vmatpush3.bf16.xpose.msra.mxu1 %v842_v50 }
 0x2b3   : > { %2325 = vmatprep.subr.bf16.mxu1 %v2556_v33 }
 0x2b4   : > { %v886_v51 = vpop.permute.xlu0 %885 }
 0x2b5   : > { %v891_v52 = vsel %vm837_vm3, %v886_v51, 0 }
 0x2b6   : > { %2320 = vmatpush3.bf16.xpose.msra.mxu0 %v891_v52 }
 0x2b7   : > { %2331 = vmatprep.subr.bf16.mxu0 %v2556_v33 }
 0x2b9   : > { %2316 = vmatmul.mubr.msk.bf16.vlgmr.msra.gmra.mrb[0].mxu1 %vm837_vm3, %v2773_v45 }
 0x2ba   : > { %2327 = vmatprep.mubr.msk.bf16.mxu1 %vm2557_vm1, %v2556_v33 }
 0x2bd   : > { %2322 = vmatmul.mubr.msk.bf16.vlgmr.msra.gmra.mrb[4].mxu0 %vm837_vm3, %v2776_v48 }
 0x2be   : > { %2333 = vmatprep.mubr.msk.bf16.mxu0 %vm2557_vm1, %v2556_v33 }
 0x38c   : > { %v878_v4 = vpop.f32.mrb[0].mxu1 }
 0x38d   : > { %v879_v5 = vadd.f32 %v878_v4, %v2794_v2  ;;  %v2317_v6 = vpop.f32.mrb[1].mxu1 }
 0x38e   : > { %v881_v8 = vpop.f32.mrb[2].mxu1 }
 0x38f   : > { %v2318_v9 = vpop.f32.mrb[3].mxu1  ;;  %v933_v10 = vsel %vm837_vm3, %v879_v5, -inf }
 0x390   : > { %934 = vmax.xlane.f32.xlu1 %v933_v10  ;;  %v927_v11 = vpop.f32.mrb[4].mxu0 }
 0x391   : > { %v928_v12 = vadd.f32 %v927_v11, %v2797_v7  ;;  %v2323_v13 = vpop.f32.mrb[5].mxu0 }
 0x392   : > { %v930_v14 = vpop.f32.mrb[6].mxu0 }
 0x393   : > { %v2324_v15 = vpop.f32.mrb[7].mxu0  ;;  %v936_v16 = vsel %vm837_vm3, %v928_v12, -inf }
 0x394   : > { %937 = vmax.xlane.f32.xlu1 %v936_v16 }
 0x3a5   : > { %957 = vrot.lane.b32.xlu1 %v2773_v45, %s2560_s1 }
 0x3a9   : > { %1006 = vrot.lane.b32.xlu1 %v2776_v48, %s2560_s1  ;;  %s2571_s1 = smov 16  }
 0x3ad   : > { %1058 = vrot.lane.b32.xlu1 %v2773_v45, %s2561_s16 }
 0x41d   : > { %v935_v17 = vpop.xlane.xlu1 %934 }
 0x41e   : > { %v939_v18 = vsub.f32 %v879_v5, %v935_v17 }
 0x420   : > { %v941_v19 = vmul.f32 1.442695, %v939_v18 }
 0x421   : > { %v938_v20 = vpop.xlane.xlu1 %937 }
 0x422   : > { %2474 = vpow2.f32 %v941_v19  ;;  %v940_v21 = vsub.f32 %v928_v12, %v938_v20 }
 0x424   : > { %v943_v22 = vmul.f32 1.442695, %v940_v21 }
 0x425   : > { %v958_v23 = vpop.permute.xlu1 %957 }
 0x426   : > { %2476 = vpow2.f32 %v943_v22  ;;  %v964_v24 = vsel %vm962_vm4, %v958_v23, 0 }
 0x427   : > { %2326 = vmatpush3.bf16.msra.mxu1 %v964_v24 }
 0x428   : > { %2337 = vmatprep.subr.bf16.mxu1 %v2556_v33 }
 0x429   : > { %v1007_v25 = vpop.permute.xlu1 %1006 }
 0x42a   : > { %v1012_v26 = vsel %vm962_vm4, %v1007_v25, 0 }
 0x42b   : > { %2332 = vmatpush3.bf16.msra.mxu0 %v1012_v26 }
 0x42c   : > { %v2475_v27 = vpop.eup %2474  ;;  %2343 = vmatprep.subr.bf16.mxu0 %v2556_v33 }
 0x42d   : > { %v945_v28 = vsel %vm837_vm3, %v2475_v27, 0.0  ;;  %v1059_v31 = vpop.permute.xlu1 %1058 }
 0x42e   : > { %946 = vadd.xlane.f32.xlu0 %v945_v28  ;;  %v1064_v41 = vsel %vm837_vm3, %v1059_v31, 0 }
 0x430   : > { %v2477_v29 = vpop.eup %2476 }
 0x431   : > { %v948_v30 = vsel %vm837_vm3, %v2477_v29, 0.0 }
 0x432   : > { %949 = vadd.xlane.f32.xlu1 %v948_v30 }
 0x443   : > { %1108 = vrot.lane.b32.xlu1 %v2776_v48, %s2561_s16  ;;  %s3064_s16 = sld [smem:[#allocation8_spill]] }
 0x444   : > { %1056 = vrot.lane.b32.xlu0 %v2773_v45, %s2562_s26 }
 0x447   : > { %1106 = vrot.lane.b32.xlu1 %v2776_v48, %s2562_s26  ;;  %s2572_s26 = smov 24  }
 0x4bb   : > { %v947_v32 = vpop.xlane.xlu0 %946 }
 0x4bc   : > { %2478 = vrcp.f32 %v947_v32 }
 0x4bf   : > { %v950_v34 = vpop.xlane.xlu1 %949  ;;  %v1057_v47 = vpop.permute.xlu0 %1056 }
 0x4c0   : > { %2480 = vrcp.f32 %v950_v34 }
 0x4c3   : > { %v1109_v43 = vpop.permute.xlu1 %1108 }
 0x4c4   : > { %v1114_v46 = vsel %vm837_vm3, %v1109_v43, 0 }
 0x4c6   : > { %v2479_v35 = vpop.eup %2478 }
 0x4c7   : > { %v953_v36 = vmul.f32 %v2479_v35, %v2475_v27  ;;  %v1107_v49 = vpop.permute.xlu1 %1106 }
 0x4c9   : > { %v955_v39 = vpack.c.bf16 %v953_v36, %v953_v36 }
 0x4ca   : > { %v2481_v40 = vpop.eup %2480 }
 0x4cb   : > { %v954_v42 = vmul.f32 %v2481_v40, %v2477_v29  ;;  %2328 = vmatmul.mubr.msk.bf16.vlgmr.msra.gmra.mrb[4].mxu1 %vm837_vm3, %v955_v39 }
 0x4cc   : > { %2338 = vmatpush3.bf16.xpose.msra.mxu1 %v1064_v41  ;;  %2339 = vmatprep.mubr.msk.bf16.mxu1 %vm2557_vm1, %v2556_v33 }
 0x4cd   : > { %v956_v44 = vpack.c.bf16 %v954_v42, %v954_v42  ;;  %2349 = vmatprep.subr.bf16.mxu1 %v2556_v33 }
 0x4cf   : > { %2334 = vmatmul.mubr.msk.bf16.vlgmr.msra.gmra.mrb[8].mxu0 %vm837_vm3, %v956_v44 }
 0x4d0   : > { %2344 = vmatpush3.bf16.xpose.msra.mxu0 %v1114_v46  ;;  %2345 = vmatprep.mubr.msk.bf16.mxu0 %vm2557_vm1, %v2556_v33 }
 0x4d1   : > { %2355 = vmatprep.subr.bf16.mxu0 %v2556_v33 }
 0x4d3   : > { %2340 = vmatmul.mubr.msk.bf16.vlgmr.msra.gmra.mrb[8].mxu1 %vm837_vm3, %v1057_v47 }
 0x4d4   : > { %2351 = vmatprep.mubr.msk.bf16.mxu1 %vm2557_vm1, %v2556_v33 }
 0x4d7   : > { %2346 = vmatmul.mubr.msk.bf16.vlgmr.msra.gmra.mrb[12].mxu0 %vm837_vm3, %v1107_v49 }
 0x4d8   : > { %2357 = vmatprep.mubr.msk.bf16.mxu0 %vm2557_vm1, %v2556_v33 }
 0x59e   : > { %v1000_v50 = vpop.f32.mrb[4].mxu1 }
 0x59f   : > { %1054 = vst.msk [vmem:[#allocation3] sm:$0xff] %vm837_vm3, %v1000_v50  ;;  %v2329_v51 = vpop.f32.mrb[5].mxu1 }
 0x5a0   : > { %v1003_v52 = vpop.f32.mrb[6].mxu1 }
 0x5a1   : > { %v2330_v53 = vpop.f32.mrb[7].mxu1 }
 0x5a2   : > { %v1048_v54 = vpop.f32.mrb[8].mxu0 }
 0x5a3   : > { %1055 = vst.msk [vmem:[#allocation3 + $0x8] sm:$0xff] %vm837_vm3, %v1048_v54  ;;  %v2335_v55 = vpop.f32.mrb[9].mxu0 }
 0x5a4   : > { %v1051_v56 = vpop.f32.mrb[10].mxu0 }
 0x5a5   : > { %v2336_v57 = vpop.f32.mrb[11].mxu0 }
 0x5a6   : > { %v1100_v58 = vpop.f32.mrb[8].mxu1 }
 0x5a7   : > { %v1101_v59 = vadd.f32 %v1100_v58, %v2794_v2  ;;  %v2341_v60 = vpop.f32.mrb[9].mxu1 }
 0x5a8   : > { %v1103_v61 = vpop.f32.mrb[10].mxu1 }
 0x5a9   : > { %v2342_v62 = vpop.f32.mrb[11].mxu1  ;;  %v1156_v63 = vsel %vm837_vm3, %v1101_v59, -inf }
 0x5aa   : > { %1157 = vmax.xlane.f32.xlu1 %v1156_v63  ;;  %v1150_v0 = vpop.f32.mrb[12].mxu0 }
 0x5ab   : > { %v1151_v1 = vadd.f32 %v1150_v0, %v2797_v7  ;;  %v2347_v3 = vpop.f32.mrb[13].mxu0 }
 0x5ac   : > { %v1153_v4 = vpop.f32.mrb[14].mxu0 }
 0x5ad   : > { %v2348_v5 = vpop.f32.mrb[15].mxu0  ;;  %v1159_v6 = vsel %vm837_vm3, %v1151_v1, -inf }
 0x5ae   : > { %1160 = vmax.xlane.f32.xlu0 %v1159_v6 }
 0x5bb   : > { %1180 = vrot.lane.b32.xlu1 %v2773_v45, %s2563_s24 }
 0x5bf   : > { %1289 = vrot.lane.b32.xlu1 %v2773_v45, %s2564_s30 }
 0x5c4   : > { %1228 = vrot.lane.b32.xlu0 %v2776_v48, %s2563_s24 }
 0x5c8   : > { %1287 = vrot.lane.b32.xlu0 %v2773_v45, %s2565_s29 }
 0x637   : > { %v1158_v8 = vpop.xlane.xlu1 %1157 }
 0x638   : > { %v1162_v9 = vsub.f32 %v1101_v59, %v1158_v8 }
 0x63a   : > { %v1164_v10 = vmul.f32 1.442695, %v1162_v9 }
 0x63b   : > { %v1181_v11 = vpop.permute.xlu1 %1180  ;;  %v1161_v12 = vpop.xlane.xlu0 %1160 }
 0x63c   : > { %2482 = vpow2.f32 %v1164_v10  ;;  %v1186_v13 = vsel %vm962_vm4, %v1181_v11, 0  ;;  %v1163_v14 = vsub.f32 %v1151_v1, %v1161_v12 }
 0x63d   : > { %2350 = vmatpush3.bf16.msra.mxu1 %v1186_v13 }
 0x63e   : > { %v1166_v15 = vmul.f32 1.442695, %v1163_v14  ;;  %2361 = vmatprep.subr.bf16.mxu1 %v2556_v33 }
 0x63f   : > { %v1229_v16 = vpop.permute.xlu0 %1228  ;;  %v1290_v22 = vpop.permute.xlu1 %1289 }
 0x640   : > { %2484 = vpow2.f32 %v1166_v15  ;;  %v1234_v17 = vsel %vm962_vm4, %v1229_v16, 0  ;;  %v1295_v29 = vsel %vm837_vm3, %v1290_v22, 0 }
 0x641   : > { %2356 = vmatpush3.bf16.msra.mxu0 %v1234_v17 }
 0x642   : > { %2367 = vmatprep.subr.bf16.mxu0 %v2556_v33 }
 0x643   : > { %v1288_v35 = vpop.permute.xlu0 %1287 }
 0x646   : > { %v2483_v18 = vpop.eup %2482 }
 0x647   : > { %v1168_v19 = vsel %vm837_vm3, %v2483_v18, 0.0 }
 0x648   : > { %1169 = vadd.xlane.f32.xlu1 %v1168_v19 }
 0x64a   : > { %v2485_v20 = vpop.eup %2484 }
 0x64b   : > { %v1171_v21 = vsel %vm837_vm3, %v2485_v20, 0.0 }
 0x64c   : > { %1172 = vadd.xlane.f32.xlu1 %v1171_v21 }
 0x65d   : > { %1339 = vrot.lane.b32.xlu1 %v2776_v48, %s2564_s30 }
 0x661   : > { %1337 = vrot.lane.b32.xlu1 %v2776_v48, %s2565_s29  ;;  %s3065_s29 = scalar_lea.vmem %s3036_s7, %s2672_s23 }
 0x6d5   : > { %v1170_v23 = vpop.xlane.xlu1 %1169 }
 0x6d6   : > { %2486 = vrcp.f32 %v1170_v23 }
 0x6d9   : > { %v1173_v24 = vpop.xlane.xlu1 %1172 }
 0x6da   : > { %2488 = vrcp.f32 %v1173_v24 }
 0x6dd   : > { %v1340_v31 = vpop.permute.xlu1 %1339 }
 0x6de   : > { %v1345_v34 = vsel %vm837_vm3, %v1340_v31, 0 }
 0x6e0   : > { %v2487_v25 = vpop.eup %2486 }
 0x6e1   : > { %v1176_v26 = vmul.f32 %v2487_v25, %v2483_v18  ;;  %v1338_v36 = vpop.permute.xlu1 %1337 }
 0x6e3   : > { %v1178_v27 = vpack.c.bf16 %v1176_v26, %v1176_v26 }
 0x6e4   : > { %v2489_v28 = vpop.eup %2488 }
 0x6e5   : > { %v1177_v30 = vmul.f32 %v2489_v28, %v2485_v20  ;;  %2352 = vmatmul.mubr.msk.bf16.vlgmr.msra.gmra.mrb[12].mxu1 %vm837_vm3, %v1178_v27 }
 0x6e6   : > { %2362 = vmatpush3.bf16.xpose.msra.mxu1 %v1295_v29  ;;  %2363 = vmatprep.mubr.msk.bf16.mxu1 %vm2557_vm1, %v2556_v33 }
 0x6e7   : > { %v1179_v32 = vpack.c.bf16 %v1177_v30, %v1177_v30  ;;  %2373 = vmatprep.subr.bf16.mxu1 %v2556_v33 }
 0x6e9   : > { %2358 = vmatmul.mubr.msk.bf16.vlgmr.msra.gmra.mrb[16].mxu0 %vm837_vm3, %v1179_v32 }
 0x6ea   : > { %2368 = vmatpush3.bf16.xpose.msra.mxu0 %v1345_v34  ;;  %2369 = vmatprep.mubr.msk.bf16.mxu0 %vm2557_vm1, %v2556_v33 }
 0x6eb   : > { %2379 = vmatprep.subr.bf16.mxu0 %v2556_v33 }
 0x6ed   : > { %2364 = vmatmul.mubr.msk.bf16.vlgmr.msra.gmra.mrb[16].mxu1 %vm837_vm3, %v1288_v35 }
 0x6ee   : > { %2375 = vmatprep.mubr.msk.bf16.mxu1 %vm2557_vm1, %v2556_v33 }
 0x6f1   : > { %2370 = vmatmul.mubr.msk.bf16.vlgmr.msra.gmra.mrb[20].mxu0 %vm837_vm3, %v1338_v36 }
 0x6f2   : > { %2381 = vmatprep.mubr.msk.bf16.mxu0 %vm2557_vm1, %v2556_v33 }
 0x7b8   : > { %v2864_v39 = vpop.f32.mrb[12].mxu1 }
 0x7b9   : > { %v2353_v40 = vpop.f32.mrb[13].mxu1 }
 0x7ba   : > { %v1225_v41 = vpop.f32.mrb[14].mxu1 }
 0x7bb   : > { %v2354_v42 = vpop.f32.mrb[15].mxu1 }
 0x7bc   : > { %v2866_v43 = vpop.f32.mrb[16].mxu0 }
 0x7bd   : > { %v2359_v44 = vpop.f32.mrb[17].mxu0 }
 0x7be   : > { %v1273_v46 = vpop.f32.mrb[18].mxu0 }
 0x7bf   : > { %v2360_v47 = vpop.f32.mrb[19].mxu0 }
 0x7c0   : > { %v1331_v49 = vpop.f32.mrb[16].mxu1 }
 0x7c1   : > { %v1332_v50 = vadd.f32 %v1331_v49, %v2794_v2  ;;  %v2365_v51 = vpop.f32.mrb[17].mxu1 }
 0x7c2   : > { %v1334_v52 = vpop.f32.mrb[18].mxu1 }
 0x7c3   : > { %v2366_v53 = vpop.f32.mrb[19].mxu1  ;;  %v1387_v54 = vsel %vm837_vm3, %v1332_v50, -inf }
 0x7c4   : > { %1388 = vmax.xlane.f32.xlu0 %v1387_v54  ;;  %v1381_v55 = vpop.f32.mrb[20].mxu0 }
 0x7c5   : > { %v1382_v56 = vadd.f32 %v1381_v55, %v2797_v7  ;;  %v2371_v57 = vpop.f32.mrb[21].mxu0 }
 0x7c6   : > { %v1384_v58 = vpop.f32.mrb[22].mxu0 }
 0x7c7   : > { %v2372_v59 = vpop.f32.mrb[23].mxu0  ;;  %v1390_v60 = vsel %vm837_vm3, %v1382_v56, -inf }
 0x7c8   : > { %1391 = vmax.xlane.f32.xlu1 %v1390_v60 }
 0x7d9   : > { %1411 = vrot.lane.b32.xlu1 %v2773_v45, %s2566_s0 }
 0x7dd   : > { %1520 = vrot.lane.b32.xlu1 %v2773_v45, %s2567_s17 }
 0x7e1   : > { %1570 = vrot.lane.b32.xlu1 %v2776_v48, %s2567_s17  ;;  %s3066_s17 = scalar_lea.vmem %s3037_s8, %s2672_s23 }
 0x7e5   : > { %1568 = vrot.lane.b32.xlu1 %v2776_v48, %s2568_s18 }
 0x851   : > { %v1389_v61 = vpop.xlane.xlu0 %1388 }
 0x852   : > { %v1393_v62 = vsub.f32 %v1332_v50, %v1389_v61 }
 0x854   : > { %v1395_v63 = vmul.f32 1.442695, %v1393_v62 }
 0x855   : > { %v1392_v0 = vpop.xlane.xlu1 %1391 }
 0x856   : > { %2490 = vpow2.f32 %v1395_v63  ;;  %v1394_v1 = vsub.f32 %v1382_v56, %v1392_v0 }
 0x858   : > { %v1397_v3 = vmul.f32 1.442695, %v1394_v1 }
 0x859   : > { %v1412_v4 = vpop.permute.xlu1 %1411 }
 0x85a   : > { %2492 = vpow2.f32 %v1397_v3  ;;  %v1417_v5 = vsel %vm962_vm4, %v1412_v4, 0 }
 0x85b   : > { %2374 = vmatpush3.bf16.msra.mxu1 %v1417_v5 }
 0x85c   : > { %2385 = vmatprep.subr.bf16.mxu1 %v2556_v33 }
 0x85d   : > { %v1521_v16 = vpop.permute.xlu1 %1520 }
 0x85e   : > { %v1526_v20 = vsel %vm837_vm3, %v1521_v16, 0  ;;  %v1754_v16 = vld [vmem:[%s3064_s16 + $0x18] sm:$0xff] }
 0x860   : > { %v2491_v6 = vpop.eup %2490 }
 0x861   : > { %v1399_v8 = vsel %vm837_vm3, %v2491_v6, 0.0  ;;  %v1571_v22 = vpop.permute.xlu1 %1570 }
 0x862   : > { %1400 = vadd.xlane.f32.xlu0 %v1399_v8  ;;  %v1576_v24 = vsel %vm837_vm3, %v1571_v22, 0 }
 0x864   : > { %v2493_v9 = vpop.eup %2492 }
 0x865   : > { %v1402_v10 = vsel %vm837_vm3, %v2493_v9, 0.0  ;;  %v1569_v26 = vpop.permute.xlu1 %1568 }
 0x866   : > { %1403 = vadd.xlane.f32.xlu0 %v1402_v10 }
 0x87c   : > { %1459 = vrot.lane.b32.xlu0 %v2776_v48, %s2566_s0 }
 0x880   : > { %1518 = vrot.lane.b32.xlu0 %v2773_v45, %s2568_s18 }
 0x8ef   : > { %v1401_v11 = vpop.xlane.xlu0 %1400 }
 0x8f0   : > { %2494 = vrcp.f32 %v1401_v11 }
 0x8f3   : > { %v1404_v12 = vpop.xlane.xlu0 %1403 }
 0x8f4   : > { %2496 = vrcp.f32 %v1404_v12  ;;  %v1751_v12 = vld [vmem:[%s3064_s16] sm:$0xff] }
 0x8f7   : > { %v1460_v13 = vpop.permute.xlu0 %1459 }
 0x8f8   : > { %v1465_v14 = vsel %vm962_vm4, %v1460_v13, 0  ;;  %v1752_v13 = vld [vmem:[%s3064_s16 + $0x8] sm:$0xff] }
 0x8f9   : > { %2380 = vmatpush3.bf16.msra.mxu0 %v1465_v14  ;;  %v1753_v14 = vld [vmem:[%s3064_s16 + $0x10] sm:$0xff] }
 0x8fa   : > { %v2495_v15 = vpop.eup %2494  ;;  %2391 = vmatprep.subr.bf16.mxu0 %v2556_v33 }
 0x8fb   : > { %v1407_v17 = vmul.f32 %v2495_v15, %v2491_v6  ;;  %v1519_v25 = vpop.permute.xlu0 %1518  ;;  %v1756_v15 = vpack.c.bf16 %v1752_v13, %v1751_v12  ;;  %v1932_v12 = vld [vmem:[%s2714_s21] sm:$0xff]  ;;  %v1933_v13 = vld [vmem:[%s2714_s21 + $0x8] sm:$0xff] }
 0x8fd   : > { %v1409_v18 = vpack.c.bf16 %v1407_v17, %v1407_v17  ;;  %v1757_v17 = vpack.c.bf16 %v1754_v16, %v1753_v14  ;;  %v1934_v14 = vld [vmem:[%s2714_s21 + $0x10] sm:$0xff]  ;;  %v1935_v16 = vld [vmem:[%s2714_s21 + $0x18] sm:$0xff] }
 0x8fe   : > { %v2497_v19 = vpop.eup %2496 }
 0x8ff   : > { %v1408_v21 = vmul.f32 %v2497_v19, %v2493_v9  ;;  %2376 = vmatmul.mubr.msk.bf16.vlgmr.msra.gmra.mrb[20].mxu1 %vm837_vm3, %v1409_v18 }
 0x900   : > { %2386 = vmatpush3.bf16.xpose.msra.mxu1 %v1526_v20  ;;  %2387 = vmatprep.mubr.msk.bf16.mxu1 %vm2557_vm1, %v2556_v33 }
 0x901   : > { %v1410_v23 = vpack.c.bf16 %v1408_v21, %v1408_v21  ;;  %2397 = vmatprep.subr.bf16.mxu1 %v2556_v33 }
 0x903   : > { %2382 = vmatmul.mubr.msk.bf16.vlgmr.msra.gmra.mrb[24].mxu0 %vm837_vm3, %v1410_v23 }
 0x904   : > { %2392 = vmatpush3.bf16.xpose.msra.mxu0 %v1576_v24  ;;  %2393 = vmatprep.mubr.msk.bf16.mxu0 %vm2557_vm1, %v2556_v33 }
 0x905   : > { %2403 = vmatprep.subr.bf16.mxu0 %v2556_v33 }
 0x907   : > { %2388 = vmatmul.mubr.msk.bf16.vlgmr.msra.gmra.mrb[24].mxu1 %vm837_vm3, %v1519_v25 }
 0x908   : > { %2399 = vmatprep.mubr.msk.bf16.mxu1 %vm2557_vm1, %v2556_v33 }
 0x90b   : > { %2394 = vmatmul.mubr.msk.bf16.vlgmr.msra.gmra.mrb[28].mxu0 %vm837_vm3, %v1569_v26 }
 0x90c   : > { %2405 = vmatprep.mubr.msk.bf16.mxu0 %vm2557_vm1, %v2556_v33 }
 0x9d2   : > { %v1453_v27 = vpop.f32.mrb[20].mxu1 }
 0x9d3   : > { %v2377_v28 = vpop.f32.mrb[21].mxu1 }
 0x9d4   : > { %v1456_v29 = vpop.f32.mrb[22].mxu1 }
 0x9d5   : > { %v2378_v30 = vpop.f32.mrb[23].mxu1 }
 0x9d6   : > { %v1501_v31 = vpop.f32.mrb[24].mxu0 }
 0x9d7   : > { %v2383_v32 = vpop.f32.mrb[25].mxu0 }
 0x9d8   : > { %v1504_v34 = vpop.f32.mrb[26].mxu0 }
 0x9d9   : > { %v2384_v35 = vpop.f32.mrb[27].mxu0 }
 0x9da   : > { %v1562_v36 = vpop.f32.mrb[24].mxu1 }
 0x9db   : > { %v1563_v40 = vadd.f32 %v1562_v36, %v2794_v2  ;;  %v2389_v41 = vpop.f32.mrb[25].mxu1 }
 0x9dc   : > { %v1565_v42 = vpop.f32.mrb[26].mxu1 }
 0x9dd   : > { %v2390_v44 = vpop.f32.mrb[27].mxu1  ;;  %v1618_v46 = vsel %vm837_vm3, %v1563_v40, -inf }
 0x9de   : > { %1619 = vmax.xlane.f32.xlu0 %v1618_v46  ;;  %v1612_v47 = vpop.f32.mrb[28].mxu0 }
 0x9df   : > { %v1613_v49 = vadd.f32 %v1612_v47, %v2797_v7  ;;  %v2395_v50 = vpop.f32.mrb[29].mxu0 }
 0x9e0   : > { %v1615_v51 = vpop.f32.mrb[30].mxu0 }
 0x9e1   : > { %v2396_v52 = vpop.f32.mrb[31].mxu0  ;;  %v1621_v53 = vsel %vm837_vm3, %v1613_v49, -inf }
 0x9e2   : > { %1622 = vmax.xlane.f32.xlu1 %v1621_v53 }
 0x9f3   : > { %1642 = vrot.lane.b32.xlu1 %v2773_v45, %s2569_s20 }
 0x9f7   : > { %1278 = vrot.lane.b32.xlu1 %v2864_v39, %s2570_s27 }
 0x9fb   : > { %1280 = vrot.lane.b32.xlu1 %v2866_v43, %s2570_s27 }
 0x9ff   : > { %1511 = vrot.lane.b32.xlu1 %v1501_v31, %s2571_s1  ;;  %v2240_v31 = vld [vmem:[%s3065_s29] ss:$0 sm:$0xff] }
 0xa6b   : > { %v1620_v2 = vpop.xlane.xlu0 %1619 }
 0xa6c   : > { %v1624_v7 = vsub.f32 %v1563_v40, %v1620_v2 }
 0xa6e   : > { %v1626_v54 = vmul.f32 1.442695, %v1624_v7 }
 0xa6f   : > { %v1623_v55 = vpop.xlane.xlu1 %1622 }
 0xa70   : > { %2498 = vpow2.f32 %v1626_v54  ;;  %v1625_v56 = vsub.f32 %v1613_v49, %v1623_v55  ;;  %v1856_v55 = vld [vmem:[%s2704_s4] sm:$0xff] }
 0xa72   : > { %v1628_v57 = vmul.f32 1.442695, %v1625_v56  ;;  %v1857_v56 = vld [vmem:[%s2704_s4 + $0x8] sm:$0xff] }
 0xa73   : > { %v1643_v58 = vpop.permute.xlu1 %1642 }
 0xa74   : > { %2500 = vpow2.f32 %v1628_v57  ;;  %v1648_v45 = vsel %vm962_vm4, %v1643_v58, 0  ;;  %v1861_v57 = vpack.c.bf16 %v1857_v56, %v1856_v55  ;;  %v1858_v58 = vld [vmem:[%s2704_s4 + $0x10] sm:$0xff] }
 0xa75   : > { %2398 = vmatpush3.bf16.msra.mxu1 %v1648_v45  ;;  %v1859_v45 = vld [vmem:[%s2704_s4 + $0x18] sm:$0xff] }
 0xa76   : > { %2409 = vmatprep.subr.bf16.mxu1 %v2556_v33 }
 0xa77   : > { %v1279_v39 = vpop.permute.xlu1 %1278 }
 0xa78   : > { %1285 = vst.msk [vmem:[#allocation3] sm:$0xff] %vm1284_vm5, %v1279_v39  ;;  %v1862_v39 = vpack.c.bf16 %v1859_v45, %v1858_v58 }
 0xa7a   : > { %v2499_v43 = vpop.eup %2498 }
 0xa7b   : > { %v1281_v59 = vpop.permute.xlu1 %1280  ;;  %v1630_v60 = vsel %vm837_vm3, %v2499_v43, 0.0 }
 0xa7c   : > { %1286 = vst.msk [vmem:[#allocation3 + $0x8] sm:$0xff] %vm1284_vm5, %v1281_v59  ;;  %1631 = vadd.xlane.f32.xlu0 %v1630_v60 }
 0xa7e   : > { %v2501_v61 = vpop.eup %2500 }
 0xa7f   : > { %v1512_v62 = vpop.permute.xlu1 %1511  ;;  %v1633_v63 = vsel %vm837_vm3, %v2501_v61, 0.0 }
 0xa80   : > { %1517 = vst.msk [vmem:[#allocation3 + $0x8] sm:$0xff] %vm1515_vm6, %v1512_v62  ;;  %1634 = vadd.xlane.f32.xlu0 %v1633_v63 }
 0xa96   : > { %1690 = vrot.lane.b32.xlu0 %v2776_v48, %s2569_s20 }
 0xa9a   : > { %1509 = vrot.lane.b32.xlu0 %v1453_v27, %s2571_s1  ;;  %s3067_s1 = scalar_lea.vmem %s3038_s9, %s2672_s23 }
 0xb09   : > { %v1632_v0 = vpop.xlane.xlu0 %1631 }
 0xb0a   : > { %2502 = vrcp.f32 %v1632_v0 }
 0xb0d   : > { %v1635_v1 = vpop.xlane.xlu0 %1634 }
 0xb0e   : > { %2504 = vrcp.f32 %v1635_v1 }
 0xb11   : > { %v1691_v3 = vpop.permute.xlu0 %1690 }
 0xb12   : > { %v1696_v4 = vsel %vm962_vm4, %v1691_v3, 0  ;;  %v2242_v3 = vld [vmem:[%s3066_s17] ss:$0 sm:$0xff] }
 0xb13   : > { %2404 = vmatpush3.bf16.msra.mxu0 %v1696_v4 }
 0xb14   : > { %v2503_v5 = vpop.eup %2502  ;;  %2417 = vmatprep.subr.bf16.mxu0 %v2556_v33 }
 0xb15   : > { %v1638_v6 = vmul.f32 %v2503_v5, %v2499_v43  ;;  %v1510_v8 = vpop.permute.xlu0 %1509 }
 0xb16   : > { %1516 = vst.msk [vmem:[#allocation3] sm:$0xff] %vm1515_vm6, %v1510_v8  ;;  %v2243_v8 = vld [vmem:[%s3067_s1] ss:$0 sm:$0xff] }
 0xb17   : > { %v1640_v48 = vpack.c.bf16 %v1638_v6, %v1638_v6 }
 0xb18   : > { %v2505_v9 = vpop.eup %2504 }
 0xb19   : > { %v1639_v10 = vmul.f32 %v2505_v9, %v2501_v61  ;;  %2400 = vmatmul.mubr.msk.bf16.vlgmr.msra.gmra.mrb[28].mxu1 %vm837_vm3, %v1640_v48 }
 0xb1a   : > { %2413 = vmatprep.mubr.msk.bf16.mxu1 %vm2557_vm1, %v2556_v33  ;;  %2410 = vmatpush3.bf16.msra.mxu1 %v1756_v15  ;;  %v1941_v15 = vpack.c.bf16 %v1933_v13, %v1932_v12 }
 0xb1b   : > { %v1641_v11 = vpack.c.bf16 %v1639_v10, %v1639_v10  ;;  %2411 = vmatprep.subr.bf16.mxu1 %v2556_v33 }
 0xb1d   : > { %2406 = vmatmul.mubr.msk.bf16.vlgmr.msra.gmra.mrb[32].mxu0 %vm837_vm3, %v1641_v11 }
 0xb1e   : > { %2421 = vmatprep.mubr.msk.bf16.mxu0 %vm2557_vm1, %v2556_v33  ;;  %2412 = vmatpush3.bf16.msra.mxu1 %v1757_v17  ;;  %v1942_v17 = vpack.c.bf16 %v1935_v16, %v1934_v14  ;;  %v2248_v14 = vld [vmem:[%s676_s28] ss:$0 sm:$0xff] }
 0xb1f   : > { %2425 = vmatprep.subr.bf16.mxu1 %v2556_v33  ;;  %2418 = vmatpush3.bf16.msra.mxu0 %v1861_v57 }
 0xb20   : > { %2419 = vmatprep.subr.bf16.mxu0 %v2556_v33 }
 0xb23   : > { %2420 = vmatpush3.bf16.msra.mxu0 %v1862_v39 }
 0xbec   : > { %v1684_v18 = vpop.f32.mrb[28].mxu1 }
 0xbed   : > { %1740 = vrot.lane.b32.xlu0 %v1684_v18, %s2572_s26  ;;  %v2401_v19 = vpop.f32.mrb[29].mxu1  ;;  %v1936_v18 = vld [vmem:[%s2714_s21 + $0x20] sm:$0xff] }
 0xbee   : > { %v1687_v20 = vpop.f32.mrb[30].mxu1  ;;  %v1937_v19 = vld [vmem:[%s2714_s21 + $0x28] sm:$0xff] }
 0xbef   : > { %v2402_v21 = vpop.f32.mrb[31].mxu1  ;;  %v1943_v20 = vpack.c.bf16 %v1937_v19, %v1936_v18 }
 0xbf0   : > { %v1732_v22 = vpop.f32.mrb[32].mxu0  ;;  %v1938_v21 = vld [vmem:[%s2714_s21 + $0x30] sm:$0xff] }
 0xbf1   : > { %1742 = vrot.lane.b32.xlu1 %v1732_v22, %s2572_s26  ;;  %v2407_v23 = vpop.f32.mrb[33].mxu0  ;;  %v1939_v22 = vld [vmem:[%s2714_s21 + $0x38] sm:$0xff] }
 0xbf2   : > { %v1735_v24 = vpop.f32.mrb[34].mxu0  ;;  %v1944_v23 = vpack.c.bf16 %v1939_v22, %v1938_v21 }
 0xbf3   : > { %v2408_v25 = vpop.f32.mrb[35].mxu0  ;;  %v2244_v24 = vld [vmem:[%s665_s6] ss:$0 sm:$0xff] }
 0xc5f   : > { %v1741_v26 = vpop.permute.xlu0 %1740 }
 0xc60   : > { %1747 = vst.msk [vmem:[#allocation3] sm:$0xff] %vm1746_vm7, %v1741_v26 }
 0xc63   : > { %v1743_v27 = vpop.permute.xlu1 %1742 }
 0xc64   : > { %1748 = vst.msk [vmem:[#allocation3 + $0x8] sm:$0xff] %vm1746_vm7, %v1743_v27 }
 0xc67   : > { %v1749_v28 = vld [vmem:[#allocation3] sm:$0xff] }
 0xc6b   : > { %v1750_v29 = vld [vmem:[#allocation3 + $0x8] sm:$0xff] }
 0xc6c   : > { %v1755_v30 = vpack.c.bf16 %v1750_v29, %v1749_v28 }
 0xc6e   : > { %2414 = vmatmul.mubr.msk.bf16.vlgmr.msra.gmra.mrb[32].mxu1 %vm751_vm2, %v1755_v30 }
 0xc6f   : > { %2433 = vmatprep.mubr.msk.bf16.mxu1 %vm2557_vm1, %v2556_v33  ;;  %2426 = vmatpush3.bf16.msra.mxu1 %v1941_v15 }
 0xc70   : > { %2427 = vmatprep.subr.bf16.mxu1 %v2556_v33 }
 0xc73   : > { %2428 = vmatpush3.bf16.msra.mxu1 %v1942_v17  ;;  %v2249_v17 = vld [vmem:[%s679_s3] ss:$0 sm:$0xff] }
 0xc74   : > { %2429 = vmatprep.subr.bf16.mxu1 %v2556_v33 }
 0xc77   : > { %2430 = vmatpush3.bf16.msra.mxu1 %v1943_v20 }
 0xc78   : > { %2431 = vmatprep.subr.bf16.mxu1 %v2556_v33 }
 0xc7b   : > { %2432 = vmatpush3.bf16.msra.mxu1 %v1944_v23 }
 0xd41   : > { %v1802_v32 = vpop.f32.mrb[32].mxu1 }
 0xd42   : > { %v1803_v34 = vadd.f32 %v2240_v31, %v1802_v32  ;;  %v2415_v35 = vpop.f32.mrb[33].mxu1 }
 0xd43   : > { %v1805_v36 = vpop.f32.mrb[34].mxu1 }
 0xd44   : > { %v1806_v40 = vadd.f32 %v2240_v31, %v1805_v36  ;;  %v2416_v41 = vpop.f32.mrb[35].mxu1  ;;  %v1809_v42 = vadd.f32 %v1803_v34, %v2757_v37 }
 0xd46   : > { %v1813_v44 = vsel %vm751_vm2, %v1809_v42, 0.0  ;;  %v1810_v46 = vadd.f32 %v1806_v40, %v2759_v38 }
 0xd47   : > { %1814 = vadd.xlane.f32.xlu0 %v1813_v44 }
 0xd48   : > { %v1816_v47 = vsel %vm751_vm2, %v1810_v46, 0.0 }
 0xd49   : > { %1817 = vadd.xlane.f32.xlu1 %v1816_v47 }
 0xdd4   : > { %v1815_v49 = vpop.xlane.xlu0 %1814 }
 0xdd5   : > { %v1820_v50 = vmul.f32 0.03125, %v1815_v49 }
 0xdd6   : > { %v1818_v51 = vpop.xlane.xlu1 %1817 }
 0xdd7   : > { %v1822_v52 = vsub.f32 %v1809_v42, %v1820_v50  ;;  %v1821_v53 = vmul.f32 0.03125, %v1818_v51 }
 0xdd9   : > { %v1823_v2 = vsub.f32 %v1810_v46, %v1821_v53  ;;  %v1824_v7 = vmul.f32 %v1822_v52, %v1822_v52 }
 0xddb   : > { %v1826_v37 = vsel %vm751_vm2, %v1824_v7, 0.0  ;;  %v1825_v54 = vmul.f32 %v1823_v2, %v1823_v2 }
 0xddc   : > { %1827 = vadd.xlane.f32.xlu0 %v1826_v37  ;;  %v2246_v37 = vld [vmem:[%s673_s25] ss:$0 sm:$0xff] }
 0xddd   : > { %v1829_v38 = vsel %vm751_vm2, %v1825_v54, 0.0 }
 0xde0   : > { %1830 = vadd.xlane.f32.xlu0 %v1829_v38 }
 0xe69   : > { %v1828_v43 = vpop.xlane.xlu0 %1827 }
 0xe6a   : > { %v1832_v59 = vmul.f32 0.03125, %v1828_v43 }
 0xe6c   : > { %v1834_v60 = vadd.f32 1e-12, %v1832_v59 }
 0xe6d   : > { %v1831_v61 = vpop.xlane.xlu0 %1830 }
 0xe6e   : > { %2506 = vrsqrt.f32 %v1834_v60  ;;  %v1833_v62 = vmul.f32 0.03125, %v1831_v61 }
 0xe70   : > { %v1835_v63 = vadd.f32 1e-12, %v1833_v62 }
 0xe72   : > { %2508 = vrsqrt.f32 %v1835_v63 }
 0xe78   : > { %v2507_v0 = vpop.eup %2506 }
 0xe79   : > { %v1838_v1 = vmul.f32 %v2507_v0, %v1822_v52 }
 0xe7b   : > { %v1846_v5 = vmul.f32 %v2242_v3, %v1838_v1 }
 0xe7c   : > { %v2509_v4 = vpop.eup %2508 }
 0xe7d   : > { %v1839_v6 = vmul.f32 %v2509_v4, %v1823_v2  ;;  %v1854_v9 = vadd.f32 %v2243_v8, %v1846_v5 }
 0xe7f   : > { %v1847_v48 = vmul.f32 %v2242_v3, %v1839_v6 }
 0xe81   : > { %v1855_v10 = vadd.f32 %v2243_v8, %v1847_v48 }
 0xe83   : > { %v1860_v11 = vpack.c.bf16 %v1855_v10, %v1854_v9 }
 0xe85   : > { %2422 = vmatmul.mubr.msk.bf16.vlgmr.msra.gmra.mrb[36].mxu0 %vm751_vm2, %v1860_v11 }
 0xf58   : > { %v1907_v25 = vpop.f32.mrb[36].mxu0 }
 0xf59   : > { %v1908_v26 = vadd.f32 %v2244_v24, %v1907_v25  ;;  %v2423_v27 = vpop.f32.mrb[37].mxu0 }
 0xf5a   : > { %v1910_v28 = vpop.f32.mrb[38].mxu0 }
 0xf5b   : > { %v1916_v29 = vmul.f32 0.044715, %v1908_v26  ;;  %v1911_v30 = vadd.f32 %v2244_v24, %v1910_v28  ;;  %v2424_v31 = vpop.f32.mrb[39].mxu0  ;;  %v1914_v50 = vmul.f32 0.5, %v1908_v26 }
 0xf5d   : > { %v1918_v32 = vmul.f32 %v1916_v29, %v1908_v26  ;;  %v1917_v34 = vmul.f32 0.044715, %v1911_v30  ;;  %v1915_v51 = vmul.f32 0.5, %v1911_v30 }
 0xf5f   : > { %v1920_v35 = vmul.f32 %v1918_v32, %v1908_v26  ;;  %v1919_v36 = vmul.f32 %v1917_v34, %v1911_v30 }
 0xf61   : > { %v1922_v40 = vadd.f32 %v1920_v35, %v1908_v26  ;;  %v1921_v41 = vmul.f32 %v1919_v36, %v1911_v30 }
 0xf63   : > { %v1924_v33 = vmul.f32 0.7978846, %v1922_v40  ;;  %v1923_v42 = vadd.f32 %v1921_v41, %v1911_v30 }
 0xf65   : > { %2510 = vtanh.f32 %v1924_v33  ;;  %v1925_v44 = vmul.f32 0.7978846, %v1923_v42 }
 0xf67   : > { %2512 = vtanh.f32 %v1925_v44 }
 0xf6f   : > { %v2511_v46 = vpop.eup %2510 }
 0xf70   : > { %v1928_v47 = vadd.f32 1.0, %v2511_v46 }
 0xf71   : > { %v2513_v49 = vpop.eup %2512 }
 0xf72   : > { %v1929_v52 = vadd.f32 1.0, %v2513_v49  ;;  %v1930_v53 = vmul.f32 %v1928_v47, %v1914_v50 }
 0xf74   : > { %v1931_v2 = vmul.f32 %v1929_v52, %v1915_v51 }
 0xf76   : > { %v1940_v7 = vpack.c.bf16 %v1931_v2, %v1930_v53 }
 0xf78   : > { %2434 = vmatmul.mubr.msk.bf16.vlgmr.msra.gmra.mrb[36].mxu1 %vm1952_vm8, %v1940_v7 }
0x104b   : > { %v1990_v54 = vpop.f32.mrb[36].mxu1 }
0x104c   : > { %v1991_v38 = vadd.f32 %v2246_v37, %v1990_v54  ;;  %v2435_v55 = vpop.f32.mrb[37].mxu1 }
0x104d   : > { %v1993_v56 = vpop.f32.mrb[38].mxu1 }
0x104e   : > { %v1994_v57 = vadd.f32 %v2246_v37, %v1993_v56  ;;  %v2436_v58 = vpop.f32.mrb[39].mxu1  ;;  %v1997_v45 = vadd.f32 %v1991_v38, %v1854_v9 }
0x1050   : > { %v2001_v39 = vsel %vm751_vm2, %v1997_v45, 0.0  ;;  %v1998_v43 = vadd.f32 %v1994_v57, %v1855_v10 }
0x1051   : > { %2002 = vadd.xlane.f32.xlu1 %v2001_v39 }
0x1052   : > { %v2004_v59 = vsel %vm751_vm2, %v1998_v43, 0.0 }
0x1053   : > { %2005 = vadd.xlane.f32.xlu0 %v2004_v59 }
0x10de   : > { %v2003_v60 = vpop.xlane.xlu1 %2002 }
0x10df   : > { %v2007_v61 = vmul.f32 0.03125, %v2003_v60 }
0x10e0   : > { %v2006_v62 = vpop.xlane.xlu0 %2005 }
0x10e1   : > { %v2009_v63 = vsub.f32 %v1997_v45, %v2007_v61  ;;  %v2008_v0 = vmul.f32 0.03125, %v2006_v62 }
0x10e3   : > { %v2010_v1 = vsub.f32 %v1998_v43, %v2008_v0  ;;  %v2011_v3 = vmul.f32 %v2009_v63, %v2009_v63 }
0x10e5   : > { %v2013_v4 = vsel %vm751_vm2, %v2011_v3, 0.0  ;;  %v2012_v5 = vmul.f32 %v2010_v1, %v2010_v1 }
0x10e6   : > { %2014 = vadd.xlane.f32.xlu1 %v2013_v4 }
0x10e7   : > { %v2016_v6 = vsel %vm751_vm2, %v2012_v5, 0.0 }
0x10e8   : > { %2017 = vadd.xlane.f32.xlu0 %v2016_v6 }
0x1173   : > { %v2015_v8 = vpop.xlane.xlu1 %2014 }
0x1174   : > { %v2019_v48 = vmul.f32 0.03125, %v2015_v8 }
0x1175   : > { %v2018_v9 = vpop.xlane.xlu0 %2017 }
0x1176   : > { %v2021_v10 = vadd.f32 1e-12, %v2019_v48  ;;  %v2020_v11 = vmul.f32 0.03125, %v2018_v9 }
0x1178   : > { %2514 = vrsqrt.f32 %v2021_v10  ;;  %v2022_v12 = vadd.f32 1e-12, %v2020_v11 }
0x117a   : > { %2516 = vrsqrt.f32 %v2022_v12 }
0x1182   : > { %v2515_v13 = vpop.eup %2514 }
0x1183   : > { %v2025_v15 = vmul.f32 %v2515_v13, %v2009_v63 }
0x1184   : > { %v2517_v16 = vpop.eup %2516 }
0x1185   : > { %v2033_v18 = vmul.f32 %v2248_v14, %v2025_v15  ;;  %v2026_v19 = vmul.f32 %v2517_v16, %v2010_v1  ;;  %2048 = sbr.rel (%p2250_p5) target bundleno = 4492 (0x118c), region = 92 }
0x1187   : > { %v2041_v20 = vadd.f32 %v2249_v17, %v2033_v18  ;;  %v2034_v21 = vmul.f32 %v2248_v14, %v2026_v19 }
0x1189   : > { %2043 = vst.msk [vmem:[#allocation2] sm:$0xff] %vm751_vm2, %v2041_v20  ;;  %v2042_v22 = vadd.f32 %v2249_v17, %v2034_v21  ;;  %2049 = vst.msk [vmem:[#allocation4] sm:$0xff] (!%p2250_p5), %vm751_vm2, %v2041_v20 }
0x118b   : > { %2044 = vst.msk [vmem:[#allocation2 + $0x8] sm:$0xff] %vm751_vm2, %v2042_v22  ;;  %2050 = vst.msk [vmem:[#allocation4 + $0x8] sm:$0xff] (!%p2250_p5), %vm751_vm2, %v2042_v22 }
0x118c PF: > { %p2441_p6 = scmp.eq.s32.totalorder %s2666_s22, 1  ;;  %s2573_s3 = smov [#allocation4]  }
0x118d   : > { %s2057_s23 = sshll.u32 %s2573_s3, 4  ;;  %s2058_s23 = int_to_ptr.vmem [resolvable:$true] %s2057_s23 }
0x118e   : > { %s2518_s28 = scalar_lea.vmem %s2058_s23, 256  ;;  %p2525_p10 = scmp.lt.s32.totalorder %s2058_s23, %s2058_s23 }
0x118f   : > { %p2519_p7 = scmp.ne.s32.totalorder %s2058_s23, %s2518_s28  ;;  %p2526_p11 = scmp.lt.s32.totalorder %s2518_s28, %s2518_s28 }
0x1191   : > { %p2520_p8 = pnand %p2519_p7, %p2441_p6  ;;  %p2527_p12 = por %p2526_p11, %p2525_p10 }
0x1193   : > { %p2521_p9 = pneg %p2520_p8 }
0x1195   : > { %p2528_p13 = pnand %p2527_p12, %p2521_p9 }
0x1197   : > { %2531 = shalt.err (!%p2528_p13)
}
0x1198   : > { %s3068_s17 = sld [smem:[#allocation14_spill]] }
0x119e   : > { %s2532_s18 = scalar_lea.hbm %s3068_s17, 256 }
0x119f   : > { %p2533_p0 = scmp.ne.s32.totalorder %s3068_s17, %s2532_s18  ;;  %p2538_p3 = scmp.lt.u32.totalorder %s2532_s18, %s3068_s17 }
0x11a1   : > { %p2534_p1 = pnand %p2533_p0, %p2441_p6 }
0x11a3   : > { %p2535_p2 = pneg %p2534_p1 }
0x11a5   : > { %p2540_p4 = pnand %p2538_p3, %p2535_p2 }
0x11a7   : > { %2543 = shalt.err (!%p2540_p4)
}
0x11a8   : > { %s2574_s6 = smov 128  }
0x11a9   : > { %2438 = dma.vmem_to_hbm [thread:$0]  (%p2441_p6), %s2058_s23, 256, %s3068_s17, [#allocation5], %s2574_s6, %s2574_s6, %s2570_s27  }
0x11aa   : > { %2549 = dma.done.wait (%p2441_p6), [#allocation5], 256  }
0x11ab   : > { %2551 = vsyncadd (%p2441_p6), [#allocation5], 4294967040 }
0x11ac PF: > { %s3069_s24 = sld [smem:[#allocation7_spill]] }
0x11b2   : > { %s27_s21 = sadd.s32 1, %s3069_s24  }
0x11b3   : > { %p24_p5 = scmp.ge.s32.totalorder %s27_s21, 4  }
0x11b5   :  { %26 = sbr.rel (!%p24_p5) target bundleno = 8 (0x8), region = 152 }
0x11bc   :  { %2073 = vsyncpa [#allocation5], 1 }
0x11bd   :  { %2075 = vsyncpa [#allocation5 + $0x1], 1 }

</bundles_post_ra>
